<compile_context>
chip_gen: v6e
topology: v6e:2x2x1
jax: 0.10.0
libtpu: 0.0.40
codegen_flags: <defaults>
</compile_context>

<pallas_src>
import math
import functools

import jax
import jax.numpy as jnp
from jax import lax
from jax.experimental import pallas as pl
from jax.experimental.pallas import tpu as pltpu


# ----------------------------------------------------------------------------
# Deterministic "parameters" of the module (sample grids), plain JAX glue.
# ----------------------------------------------------------------------------
def sample_boundary(step):
    # matches torch.meshgrid default (indexing='ij')
    lin2 = jnp.linspace(0.0, 1.0, 2, dtype=jnp.float32)
    lins = jnp.linspace(0.0, 1.0, step, dtype=jnp.float32)
    a = jnp.stack(jnp.meshgrid(lin2, lins, indexing="ij"), axis=-1).reshape(-1, 2)
    b = jnp.stack(jnp.meshgrid(lins, lin2, indexing="ij"), axis=-1).reshape(-1, 2)
    return jnp.concatenate([a, b], axis=0)          # [4*step, 2]


def sample_fragment(step):
    lins = jnp.linspace(0.0, 1.0, step, dtype=jnp.float32)
    return jnp.stack(
        jnp.meshgrid(lins, lins, indexing="ij"), axis=-1
    ).reshape(-1, 2)                                # [step*step, 2]


# ----------------------------------------------------------------------------
# Pallas kernel: one lane-slab per grid step, in-kernel 256-lane sub-tiles.
# ----------------------------------------------------------------------------
def _inside_loss_kernel(boxes_ref, fcorners_ref, a_ref, b_ref, c_ref, out_ref,
                        *, num_boxes, fstep, sub_tb, n_sub, slab):
    FP = fstep * fstep                 # in-box sample points (sublanes)
    F = fcorners_ref.shape[0] // 4     # fragment boxes (scalar loop)
    BP = a_ref.shape[0] // F           # boundary samples per fragment box
    SUB = sub_tb                       # lane width of the live compute tile

    # In-box fragment sample grid, built in-registers (no DMA):
    #   frag_x[p] = (p // fstep)/(fstep-1), frag_y[p] = (p % fstep)/(fstep-1)
    inv = jnp.float32(1.0 / max(fstep - 1, 1))
    p = lax.broadcasted_iota(jnp.int32, (FP, 1), 0).astype(jnp.float32)
    row = jnp.floor((p + 0.5) * jnp.float32(1.0 / fstep))
    frag_x = row * inv                                  # [FP, 1]
    frag_y = (p - row * jnp.float32(fstep)) * inv       # [FP, 1]

    f_unroll = True if F <= 8 else False
    n_pairs = BP // 2
    pair_unroll = True if n_pairs <= 32 else 4
    bp_unroll = True if BP <= 32 else 4

    lane_base = pl.program_id(0) * slab

    def sub_tile(t, total):
        tile = boxes_ref[t]                 # [8, SUB] (rows 0..3 = x0,y0,x1,y1)
        x0b = tile[0:1, :]
        y0b = tile[1:2, :]
        x1b = tile[2:3, :]
        y1b = tile[3:4, :]
        bw = x1b - x0b
        bh = y1b - y0b

        # in-box sample points, lane-dense: [FP, SUB]
        bf_x = frag_x * bw + x0b
        bf_y = frag_y * bh + y0b
        sq_bf = bf_x * bf_x + bf_y * bf_y   # |bf|^2, hoisted out of both loops

        def dist_term(k):
            # a_k*bf_x + b_k*bf_y + c_k  (add sq_bf once, after the min)
            return a_ref[k] * bf_x + b_ref[k] * bf_y + c_ref[k]

        def frag_body(f, acc):
            fx0 = fcorners_ref[4 * f + 0]
            fy0 = fcorners_ref[4 * f + 1]
            fx1 = fcorners_ref[4 * f + 2]
            fy1 = fcorners_ref[4 * f + 3]
            base = f * BP

            if BP % 2 == 0 and BP >= 4:
                # two interleaved running-min chains (more ILP on the min dep chain)
                def pair_body(j, carry):
                    da, db = carry
                    k = base + 2 * j
                    return (jnp.minimum(da, dist_term(k)),
                            jnp.minimum(db, dist_term(k + 1)))
                da, db = lax.fori_loop(
                    1, n_pairs, pair_body,
                    (dist_term(base), dist_term(base + 1)),
                    unroll=pair_unroll)
                dmin = jnp.minimum(da, db)
            else:
                def bnd_body(j, dm):
                    return jnp.minimum(dm, dist_term(base + j))
                dmin = lax.fori_loop(1, BP, bnd_body, dist_term(base),
                                     unroll=bp_unroll)

            dist = sq_bf + dmin
            # inside test: direct compares against the fragment-box corners
            inside = ((bf_x >= fx0) & (bf_y >= fy0) &
                      (bf_x <= fx1) & (bf_y <= fy1))
            return acc + jnp.where(inside, jnp.float32(0.0), dist)

        acc = lax.fori_loop(0, F, frag_body,
                            jnp.zeros((FP, SUB), jnp.float32),
                            unroll=f_unroll)

        # mask padded B columns, one cross-lane reduction per sub-tile
        col = lax.broadcasted_iota(jnp.int32, (1, SUB), 1) + lane_base + t * SUB
        masked = jnp.where(col < num_boxes, acc, jnp.float32(0.0))
        partial = jnp.sum(jnp.sum(masked, axis=1, keepdims=True),
                          axis=0, keepdims=True)            # (1, 1)
        return total + partial

    zero = jnp.zeros((1, 1), jnp.float32)
    if n_sub == 1:
        total = sub_tile(0, zero)
    else:
        total = lax.fori_loop(0, n_sub, sub_tile, zero)

    out_ref[...] = jnp.broadcast_to(total, out_ref.shape)


# ----------------------------------------------------------------------------
# Module wrapper
# ----------------------------------------------------------------------------
class InsideLoss:
    def __init__(self, nsample=16):
        self.bstep = round(nsample / 4)
        self.fstep = round(math.sqrt(nsample))
        self.BP = self.bstep * 4
        self.FP = self.fstep * self.fstep
        self.boundary = sample_boundary(self.bstep)       # [BP, 2]
        self.fragment = sample_fragment(self.fstep)       # [FP, 2]

    def __call__(self, pred, fragment_boxes, reduction="mean"):
        # `reduction` is ignored: forward() stacks a single scalar loss, so
        # mean == the loss itself (same as the PyTorch module's default path).
        pred = pred.astype(jnp.float32)
        fragment_boxes = fragment_boxes.astype(jnp.float32)
        B = pred.shape[0]

        # Lane tiling: 256-lane sub-tiles (128 when B is tiny).  At most two
        # balanced grid steps ("parallel" -> both TCs on v7x); each grid step
        # iterates over its sub-tiles in-kernel (cheap on single-TC v5e/v6e).
        SUB = 128 if B <= 128 else 256
        n_tiles = -(-B // SUB)
        G = 1 if n_tiles == 1 else 2
        n_sub = -(-n_tiles // G)          # sub-tiles per grid step
        SLAB = n_sub * SUB
        NT = G * n_sub
        B_pad = NT * SUB

        # boxes as [NT, 8, SUB]: sub-tile selection is a leading-axis index
        # in-kernel; padded rows/columns masked inside the kernel.
        pred_pad = jnp.zeros((4, B_pad), jnp.float32).at[:, :B].set(pred.T)
        boxes_3d = jnp.zeros((NT, 8, SUB), jnp.float32).at[:, :4, :].set(
            pred_pad.reshape(4, NT, SUB).transpose(1, 0, 2))

        # Precomputed SMEM tables for d^2 = |bf|^2 + a*bf_x + b*bf_y + c.
        # TODO(synk): tables are F*BP scalars each; for very large nsample*F
        # they should move to VMEM rows instead of SMEM.
        frag_wh = fragment_boxes[:, 2:] - fragment_boxes[:, :2]            # [F,2]
        fb = (self.boundary[None, :, :] * frag_wh[:, None, :]
              + fragment_boxes[:, None, :2])                               # [F,BP,2]
        a_tab = (-2.0 * fb[..., 0]).reshape(-1).astype(jnp.float32)
        b_tab = (-2.0 * fb[..., 1]).reshape(-1).astype(jnp.float32)
        c_tab = (fb[..., 0] ** 2 + fb[..., 1] ** 2).reshape(-1).astype(jnp.float32)
        fcorners = fragment_boxes.reshape(-1)                              # [4*F]

        kernel = functools.partial(
            _inside_loss_kernel, num_boxes=B, fstep=self.fstep,
            sub_tb=SUB, n_sub=n_sub, slab=SLAB)
        smem = pltpu.MemorySpace.SMEM
        partials = pl.pallas_call(
            kernel,
            out_shape=jax.ShapeDtypeStruct((G, 1, 128), jnp.float32),
            grid=(G,),
            in_specs=[
                pl.BlockSpec((n_sub, 8, SUB), lambda i: (i, 0, 0)),  # boxes
                pl.BlockSpec(memory_space=smem),                     # fcorners [4F]
                pl.BlockSpec(memory_space=smem),                     # a [F*BP]
                pl.BlockSpec(memory_space=smem),                     # b [F*BP]
                pl.BlockSpec(memory_space=smem),                     # c [F*BP]
            ],
            out_specs=pl.BlockSpec((1, 1, 128), lambda i: (i, 0, 0)),
            compiler_params=pltpu.CompilerParams(
                dimension_semantics=("parallel",)),
        )(boxes_3d, fcorners, a_tab, b_tab, c_tab)

        # per-grid-step partial sums (at most 2) -> scalar loss
        return partials[:, 0, 0].sum() / jnp.float32(B * self.FP)


# ----------------------------------------------------------------------------
# Pure-JAX reference of the PyTorch math (sanity check only).
# ----------------------------------------------------------------------------
def _inside_loss_ref(pred, frag_boxes, fragment, boundary):
    B = pred.shape[0]
    FP = fragment.shape[0]
    box_wh = pred[:, 2:] - pred[:, :2]
    frag_wh = frag_boxes[:, 2:] - frag_boxes[:, :2]
    bf = fragment[None] * box_wh[:, None, :] + pred[:, None, :2]            # [B,FP,2]
    fb = boundary[None] * frag_wh[:, None, :] + frag_boxes[:, None, :2]     # [F,BP,2]
    diff = jnp.concatenate(
        [bf[:, :, None, :] - frag_boxes[None, None, :, :2],
         frag_boxes[None, None, :, 2:] - bf[:, :, None, :]], axis=-1)
    out = ((diff >= 0).sum(-1) != 4).astype(jnp.float32)                    # [B,FP,F]
    d = bf[:, :, None, None, :] - fb[None, None, :, :, :]                   # [B,FP,F,BP,2]
    dist = jnp.min((d ** 2).sum(-1), axis=-1)                               # [B,FP,F]
    return (dist * out).sum() / (B * FP)


if __name__ == "__main__":
    key = jax.random.PRNGKey(0)

    def make_boxes(k, n):
        k1, k2 = jax.random.split(k)
        lo = jax.random.uniform(k1, (n, 2), minval=0.0, maxval=0.6)
        wh = jax.random.uniform(k2, (n, 2), minval=0.1, maxval=0.4)
        return jnp.concatenate([lo, lo + wh], axis=-1).astype(jnp.float32)

    mod = InsideLoss(nsample=16)   # bstep=4 (BP=16), fstep=4 (FP=16)
    ks = jax.random.split(key, 6)

    # case 1: tiny single tile (G=1, SUB=128, heavy lane padding + mask)
    pred = make_boxes(ks[0], 4)
    frag = make_boxes(ks[1], 3)
    loss = jax.block_until_ready(mod(pred, frag))
    ref = jax.block_until_ready(
        _inside_loss_ref(pred, frag, mod.fragment, mod.boundary))
    assert jnp.allclose(loss, ref, rtol=1e-3, atol=1e-5), (loss, ref)

    # case 2: two balanced grid steps (G=2, one 256-lane sub-tile each)
    pred2 = make_boxes(ks[2], 300)
    frag2 = make_boxes(ks[3], 5)
    loss2 = jax.block_until_ready(mod(pred2, frag2))
    ref2 = jax.block_until_ready(
        _inside_loss_ref(pred2, frag2, mod.fragment, mod.boundary))
    assert jnp.allclose(loss2, ref2, rtol=1e-3, atol=1e-5), (loss2, ref2)

    # case 3: in-kernel sub-tile loop (G=2, n_sub=2, padded tail tile)
    pred3 = make_boxes(ks[4], 600)
    frag3 = make_boxes(ks[5], 7)
    loss3 = jax.block_until_ready(mod(pred3, frag3))
    ref3 = jax.block_until_ready(
        _inside_loss_ref(pred3, frag3, mod.fragment, mod.boundary))
    assert jnp.allclose(loss3, ref3, rtol=1e-3, atol=1e-5), (loss3, ref3)

    print("KERNEL_OK")
</pallas_src>

<mosaic_0001>
module attributes {stable_mosaic.version = 11 : i64} {
  func.func @_inside_loss_kernel(%arg0: i32, %arg1: memref<1x8x128xf32, #tpu.memory_space<vmem>>, %arg2: memref<12xf32, #tpu.memory_space<smem>>, %arg3: memref<48xf32, #tpu.memory_space<smem>>, %arg4: memref<48xf32, #tpu.memory_space<smem>>, %arg5: memref<48xf32, #tpu.memory_space<smem>>, %arg6: memref<1x1x128xf32, #tpu.memory_space<vmem>>) attributes {dimension_semantics = [#tpu.dimension_semantics<parallel>], iteration_bounds = array<i64: 1>, scalar_prefetch = 0 : i64, scratch_operands = 0 : i64, tpu.core_type = #tpu.core_type<tc>, window_params = [{transform_indices = @transform_0, window_bounds = array<i64: 1, 8, 128>}, {transform_indices = @transform_1, window_bounds = array<i64: 12>}, {transform_indices = @transform_2, window_bounds = array<i64: 48>}, {transform_indices = @transform_3, window_bounds = array<i64: 48>}, {transform_indices = @transform_4, window_bounds = array<i64: 48>}, {transform_indices = @transform_5, window_bounds = array<i64: 1, 1, 128>}]} {
    %0 = tpu.iota {dimensions = array<i32: 0>} : vector<16x1xi32>
    %1 = arith.sitofp %0 : vector<16x1xi32> to vector<16x1xf32>
    %cst = arith.constant 5.000000e-01 : f32
    %2 = vector.broadcast %cst : f32 to vector<16x1xf32>
    %3 = arith.addf %1, %2 : vector<16x1xf32>
    %cst_0 = arith.constant 2.500000e-01 : f32
    %4 = vector.broadcast %cst_0 : f32 to vector<16x1xf32>
    %5 = arith.mulf %3, %4 : vector<16x1xf32>
    %6 = math.floor %5 : vector<16x1xf32>
    %cst_1 = arith.constant 0.333333343 : f32
    %7 = vector.broadcast %cst_1 : f32 to vector<16x1xf32>
    %8 = arith.mulf %6, %7 : vector<16x1xf32>
    %cst_2 = arith.constant 4.000000e+00 : f32
    %9 = vector.broadcast %cst_2 : f32 to vector<16x1xf32>
    %10 = arith.mulf %6, %9 : vector<16x1xf32>
    %11 = arith.subf %1, %10 : vector<16x1xf32>
    %cst_3 = arith.constant 0.333333343 : f32
    %12 = vector.broadcast %cst_3 : f32 to vector<16x1xf32>
    %13 = arith.mulf %11, %12 : vector<16x1xf32>
    %c128_i32 = arith.constant 128 : i32
    %14 = arith.muli %arg0, %c128_i32 : i32
    %cst_4 = arith.constant 0.000000e+00 : f32
    %15 = vector.broadcast %cst_4 : f32 to vector<1x1xf32>
    %c0 = arith.constant 0 : index
    %c0_5 = arith.constant 0 : index
    %c0_6 = arith.constant 0 : index
    %16 = vector.load %arg1[%c0, %c0_5, %c0_6] : memref<1x8x128xf32, #tpu.memory_space<vmem>>, vector<1x8x128xf32>
    %17 = vector.shape_cast %16 : vector<1x8x128xf32> to vector<8x128xf32>
    %18 = vector.extract_strided_slice %17 {offsets = [0, 0], sizes = [1, 128], strides = [1, 1]} : vector<8x128xf32> to vector<1x128xf32>
    %19 = vector.extract_strided_slice %17 {offsets = [1, 0], sizes = [1, 128], strides = [1, 1]} : vector<8x128xf32> to vector<1x128xf32>
    %20 = vector.extract_strided_slice %17 {offsets = [2, 0], sizes = [1, 128], strides = [1, 1]} : vector<8x128xf32> to vector<1x128xf32>
    %21 = vector.extract_strided_slice %17 {offsets = [3, 0], sizes = [1, 128], strides = [1, 1]} : vector<8x128xf32> to vector<1x128xf32>
    %22 = arith.subf %20, %18 : vector<1x128xf32>
    %23 = arith.subf %21, %19 : vector<1x128xf32>
    %24 = vector.broadcast %8 : vector<16x1xf32> to vector<16x128xf32>
    %25 = vector.broadcast %22 : vector<1x128xf32> to vector<16x128xf32>
    %26 = arith.mulf %24, %25 : vector<16x128xf32>
    %27 = vector.broadcast %18 : vector<1x128xf32> to vector<16x128xf32>
    %28 = arith.addf %26, %27 : vector<16x128xf32>
    %29 = vector.broadcast %13 : vector<16x1xf32> to vector<16x128xf32>
    %30 = vector.broadcast %23 : vector<1x128xf32> to vector<16x128xf32>
    %31 = arith.mulf %29, %30 : vector<16x128xf32>
    %32 = vector.broadcast %19 : vector<1x128xf32> to vector<16x128xf32>
    %33 = arith.addf %31, %32 : vector<16x128xf32>
    %34 = arith.mulf %28, %28 : vector<16x128xf32>
    %35 = arith.mulf %33, %33 : vector<16x128xf32>
    %36 = arith.addf %34, %35 : vector<16x128xf32>
    %cst_7 = arith.constant 0.000000e+00 : f32
    %37 = vector.broadcast %cst_7 : f32 to vector<16x128xf32>
    %c0_i32 = arith.constant 0 : i32
    %c4_i32 = arith.constant 4 : i32
    %38 = arith.muli %c4_i32, %c0_i32 : i32
    %c0_i32_8 = arith.constant 0 : i32
    %39 = arith.addi %38, %c0_i32_8 : i32
    %40 = arith.index_cast %39 : i32 to index
    %41 = memref.load %arg2[%40] : memref<12xf32, #tpu.memory_space<smem>>
    %c4_i32_9 = arith.constant 4 : i32
    %42 = arith.muli %c4_i32_9, %c0_i32 : i32
    %c1_i32 = arith.constant 1 : i32
    %43 = arith.addi %42, %c1_i32 : i32
    %44 = arith.index_cast %43 : i32 to index
    %45 = memref.load %arg2[%44] : memref<12xf32, #tpu.memory_space<smem>>
    %c4_i32_10 = arith.constant 4 : i32
    %46 = arith.muli %c4_i32_10, %c0_i32 : i32
    %c2_i32 = arith.constant 2 : i32
    %47 = arith.addi %46, %c2_i32 : i32
    %48 = arith.index_cast %47 : i32 to index
    %49 = memref.load %arg2[%48] : memref<12xf32, #tpu.memory_space<smem>>
    %c4_i32_11 = arith.constant 4 : i32
    %50 = arith.muli %c4_i32_11, %c0_i32 : i32
    %c3_i32 = arith.constant 3 : i32
    %51 = arith.addi %50, %c3_i32 : i32
    %52 = arith.index_cast %51 : i32 to index
    %53 = memref.load %arg2[%52] : memref<12xf32, #tpu.memory_space<smem>>
    %c16_i32 = arith.constant 16 : i32
    %54 = arith.muli %c0_i32, %c16_i32 : i32
    %55 = arith.index_cast %54 : i32 to index
    %56 = memref.load %arg3[%55] : memref<48xf32, #tpu.memory_space<smem>>
    %57 = vector.broadcast %56 : f32 to vector<16x128xf32>
    %58 = arith.mulf %57, %28 : vector<16x128xf32>
    %59 = arith.index_cast %54 : i32 to index
    %60 = memref.load %arg4[%59] : memref<48xf32, #tpu.memory_space<smem>>
    %61 = vector.broadcast %60 : f32 to vector<16x128xf32>
    %62 = arith.mulf %61, %33 : vector<16x128xf32>
    %63 = arith.addf %58, %62 : vector<16x128xf32>
    %64 = arith.index_cast %54 : i32 to index
    %65 = memref.load %arg5[%64] : memref<48xf32, #tpu.memory_space<smem>>
    %66 = vector.broadcast %65 : f32 to vector<16x128xf32>
    %67 = arith.addf %63, %66 : vector<16x128xf32>
    %c1_i32_12 = arith.constant 1 : i32
    %68 = arith.addi %54, %c1_i32_12 : i32
    %69 = arith.index_cast %68 : i32 to index
    %70 = memref.load %arg3[%69] : memref<48xf32, #tpu.memory_space<smem>>
    %71 = vector.broadcast %70 : f32 to vector<16x128xf32>
    %72 = arith.mulf %71, %28 : vector<16x128xf32>
    %73 = arith.index_cast %68 : i32 to index
    %74 = memref.load %arg4[%73] : memref<48xf32, #tpu.memory_space<smem>>
    %75 = vector.broadcast %74 : f32 to vector<16x128xf32>
    %76 = arith.mulf %75, %33 : vector<16x128xf32>
    %77 = arith.addf %72, %76 : vector<16x128xf32>
    %78 = arith.index_cast %68 : i32 to index
    %79 = memref.load %arg5[%78] : memref<48xf32, #tpu.memory_space<smem>>
    %80 = vector.broadcast %79 : f32 to vector<16x128xf32>
    %81 = arith.addf %77, %80 : vector<16x128xf32>
    %c1_i32_13 = arith.constant 1 : i32
    %c2_i32_14 = arith.constant 2 : i32
    %82 = arith.muli %c2_i32_14, %c1_i32_13 : i32
    %83 = arith.addi %54, %82 : i32
    %84 = arith.index_cast %83 : i32 to index
    %85 = memref.load %arg3[%84] : memref<48xf32, #tpu.memory_space<smem>>
    %86 = vector.broadcast %85 : f32 to vector<16x128xf32>
    %87 = arith.mulf %86, %28 : vector<16x128xf32>
    %88 = arith.index_cast %83 : i32 to index
    %89 = memref.load %arg4[%88] : memref<48xf32, #tpu.memory_space<smem>>
    %90 = vector.broadcast %89 : f32 to vector<16x128xf32>
    %91 = arith.mulf %90, %33 : vector<16x128xf32>
    %92 = arith.addf %87, %91 : vector<16x128xf32>
    %93 = arith.index_cast %83 : i32 to index
    %94 = memref.load %arg5[%93] : memref<48xf32, #tpu.memory_space<smem>>
    %95 = vector.broadcast %94 : f32 to vector<16x128xf32>
    %96 = arith.addf %92, %95 : vector<16x128xf32>
    %97 = arith.minimumf %67, %96 : vector<16x128xf32>
    %c1_i32_15 = arith.constant 1 : i32
    %98 = arith.addi %83, %c1_i32_15 : i32
    %99 = arith.index_cast %98 : i32 to index
    %100 = memref.load %arg3[%99] : memref<48xf32, #tpu.memory_space<smem>>
    %101 = vector.broadcast %100 : f32 to vector<16x128xf32>
    %102 = arith.mulf %101, %28 : vector<16x128xf32>
    %103 = arith.index_cast %98 : i32 to index
    %104 = memref.load %arg4[%103] : memref<48xf32, #tpu.memory_space<smem>>
    %105 = vector.broadcast %104 : f32 to vector<16x128xf32>
    %106 = arith.mulf %105, %33 : vector<16x128xf32>
    %107 = arith.addf %102, %106 : vector<16x128xf32>
    %108 = arith.index_cast %98 : i32 to index
    %109 = memref.load %arg5[%108] : memref<48xf32, #tpu.memory_space<smem>>
    %110 = vector.broadcast %109 : f32 to vector<16x128xf32>
    %111 = arith.addf %107, %110 : vector<16x128xf32>
    %112 = arith.minimumf %81, %111 : vector<16x128xf32>
    %c2_i32_16 = arith.constant 2 : i32
    %c2_i32_17 = arith.constant 2 : i32
    %113 = arith.muli %c2_i32_17, %c2_i32_16 : i32
    %114 = arith.addi %54, %113 : i32
    %115 = arith.index_cast %114 : i32 to index
    %116 = memref.load %arg3[%115] : memref<48xf32, #tpu.memory_space<smem>>
    %117 = vector.broadcast %116 : f32 to vector<16x128xf32>
    %118 = arith.mulf %117, %28 : vector<16x128xf32>
    %119 = arith.index_cast %114 : i32 to index
    %120 = memref.load %arg4[%119] : memref<48xf32, #tpu.memory_space<smem>>
    %121 = vector.broadcast %120 : f32 to vector<16x128xf32>
    %122 = arith.mulf %121, %33 : vector<16x128xf32>
    %123 = arith.addf %118, %122 : vector<16x128xf32>
    %124 = arith.index_cast %114 : i32 to index
    %125 = memref.load %arg5[%124] : memref<48xf32, #tpu.memory_space<smem>>
    %126 = vector.broadcast %125 : f32 to vector<16x128xf32>
    %127 = arith.addf %123, %126 : vector<16x128xf32>
    %128 = arith.minimumf %97, %127 : vector<16x128xf32>
    %c1_i32_18 = arith.constant 1 : i32
    %129 = arith.addi %114, %c1_i32_18 : i32
    %130 = arith.index_cast %129 : i32 to index
    %131 = memref.load %arg3[%130] : memref<48xf32, #tpu.memory_space<smem>>
    %132 = vector.broadcast %131 : f32 to vector<16x128xf32>
    %133 = arith.mulf %132, %28 : vector<16x128xf32>
    %134 = arith.index_cast %129 : i32 to index
    %135 = memref.load %arg4[%134] : memref<48xf32, #tpu.memory_space<smem>>
    %136 = vector.broadcast %135 : f32 to vector<16x128xf32>
    %137 = arith.mulf %136, %33 : vector<16x128xf32>
    %138 = arith.addf %133, %137 : vector<16x128xf32>
    %139 = arith.index_cast %129 : i32 to index
    %140 = memref.load %arg5[%139] : memref<48xf32, #tpu.memory_space<smem>>
    %141 = vector.broadcast %140 : f32 to vector<16x128xf32>
    %142 = arith.addf %138, %141 : vector<16x128xf32>
    %143 = arith.minimumf %112, %142 : vector<16x128xf32>
    %c3_i32_19 = arith.constant 3 : i32
    %c2_i32_20 = arith.constant 2 : i32
    %144 = arith.muli %c2_i32_20, %c3_i32_19 : i32
    %145 = arith.addi %54, %144 : i32
    %146 = arith.index_cast %145 : i32 to index
    %147 = memref.load %arg3[%146] : memref<48xf32, #tpu.memory_space<smem>>
    %148 = vector.broadcast %147 : f32 to vector<16x128xf32>
    %149 = arith.mulf %148, %28 : vector<16x128xf32>
    %150 = arith.index_cast %145 : i32 to index
    %151 = memref.load %arg4[%150] : memref<48xf32, #tpu.memory_space<smem>>
    %152 = vector.broadcast %151 : f32 to vector<16x128xf32>
    %153 = arith.mulf %152, %33 : vector<16x128xf32>
    %154 = arith.addf %149, %153 : vector<16x128xf32>
    %155 = arith.index_cast %145 : i32 to index
    %156 = memref.load %arg5[%155] : memref<48xf32, #tpu.memory_space<smem>>
    %157 = vector.broadcast %156 : f32 to vector<16x128xf32>
    %158 = arith.addf %154, %157 : vector<16x128xf32>
    %159 = arith.minimumf %128, %158 : vector<16x128xf32>
    %c1_i32_21 = arith.constant 1 : i32
    %160 = arith.addi %145, %c1_i32_21 : i32
    %161 = arith.index_cast %160 : i32 to index
    %162 = memref.load %arg3[%161] : memref<48xf32, #tpu.memory_space<smem>>
    %163 = vector.broadcast %162 : f32 to vector<16x128xf32>
    %164 = arith.mulf %163, %28 : vector<16x128xf32>
    %165 = arith.index_cast %160 : i32 to index
    %166 = memref.load %arg4[%165] : memref<48xf32, #tpu.memory_space<smem>>
    %167 = vector.broadcast %166 : f32 to vector<16x128xf32>
    %168 = arith.mulf %167, %33 : vector<16x128xf32>
    %169 = arith.addf %164, %168 : vector<16x128xf32>
    %170 = arith.index_cast %160 : i32 to index
    %171 = memref.load %arg5[%170] : memref<48xf32, #tpu.memory_space<smem>>
    %172 = vector.broadcast %171 : f32 to vector<16x128xf32>
    %173 = arith.addf %169, %172 : vector<16x128xf32>
    %174 = arith.minimumf %143, %173 : vector<16x128xf32>
    %c4_i32_22 = arith.constant 4 : i32
    %c2_i32_23 = arith.constant 2 : i32
    %175 = arith.muli %c2_i32_23, %c4_i32_22 : i32
    %176 = arith.addi %54, %175 : i32
    %177 = arith.index_cast %176 : i32 to index
    %178 = memref.load %arg3[%177] : memref<48xf32, #tpu.memory_space<smem>>
    %179 = vector.broadcast %178 : f32 to vector<16x128xf32>
    %180 = arith.mulf %179, %28 : vector<16x128xf32>
    %181 = arith.index_cast %176 : i32 to index
    %182 = memref.load %arg4[%181] : memref<48xf32, #tpu.memory_space<smem>>
    %183 = vector.broadcast %182 : f32 to vector<16x128xf32>
    %184 = arith.mulf %183, %33 : vector<16x128xf32>
    %185 = arith.addf %180, %184 : vector<16x128xf32>
    %186 = arith.index_cast %176 : i32 to index
    %187 = memref.load %arg5[%186] : memref<48xf32, #tpu.memory_space<smem>>
    %188 = vector.broadcast %187 : f32 to vector<16x128xf32>
    %189 = arith.addf %185, %188 : vector<16x128xf32>
    %190 = arith.minimumf %159, %189 : vector<16x128xf32>
    %c1_i32_24 = arith.constant 1 : i32
    %191 = arith.addi %176, %c1_i32_24 : i32
    %192 = arith.index_cast %191 : i32 to index
    %193 = memref.load %arg3[%192] : memref<48xf32, #tpu.memory_space<smem>>
    %194 = vector.broadcast %193 : f32 to vector<16x128xf32>
    %195 = arith.mulf %194, %28 : vector<16x128xf32>
    %196 = arith.index_cast %191 : i32 to index
    %197 = memref.load %arg4[%196] : memref<48xf32, #tpu.memory_space<smem>>
    %198 = vector.broadcast %197 : f32 to vector<16x128xf32>
    %199 = arith.mulf %198, %33 : vector<16x128xf32>
    %200 = arith.addf %195, %199 : vector<16x128xf32>
    %201 = arith.index_cast %191 : i32 to index
    %202 = memref.load %arg5[%201] : memref<48xf32, #tpu.memory_space<smem>>
    %203 = vector.broadcast %202 : f32 to vector<16x128xf32>
    %204 = arith.addf %200, %203 : vector<16x128xf32>
    %205 = arith.minimumf %174, %204 : vector<16x128xf32>
    %c5_i32 = arith.constant 5 : i32
    %c2_i32_25 = arith.constant 2 : i32
    %206 = arith.muli %c2_i32_25, %c5_i32 : i32
    %207 = arith.addi %54, %206 : i32
    %208 = arith.index_cast %207 : i32 to index
    %209 = memref.load %arg3[%208] : memref<48xf32, #tpu.memory_space<smem>>
    %210 = vector.broadcast %209 : f32 to vector<16x128xf32>
    %211 = arith.mulf %210, %28 : vector<16x128xf32>
    %212 = arith.index_cast %207 : i32 to index
    %213 = memref.load %arg4[%212] : memref<48xf32, #tpu.memory_space<smem>>
    %214 = vector.broadcast %213 : f32 to vector<16x128xf32>
    %215 = arith.mulf %214, %33 : vector<16x128xf32>
    %216 = arith.addf %211, %215 : vector<16x128xf32>
    %217 = arith.index_cast %207 : i32 to index
    %218 = memref.load %arg5[%217] : memref<48xf32, #tpu.memory_space<smem>>
    %219 = vector.broadcast %218 : f32 to vector<16x128xf32>
    %220 = arith.addf %216, %219 : vector<16x128xf32>
    %221 = arith.minimumf %190, %220 : vector<16x128xf32>
    %c1_i32_26 = arith.constant 1 : i32
    %222 = arith.addi %207, %c1_i32_26 : i32
    %223 = arith.index_cast %222 : i32 to index
    %224 = memref.load %arg3[%223] : memref<48xf32, #tpu.memory_space<smem>>
    %225 = vector.broadcast %224 : f32 to vector<16x128xf32>
    %226 = arith.mulf %225, %28 : vector<16x128xf32>
    %227 = arith.index_cast %222 : i32 to index
    %228 = memref.load %arg4[%227] : memref<48xf32, #tpu.memory_space<smem>>
    %229 = vector.broadcast %228 : f32 to vector<16x128xf32>
    %230 = arith.mulf %229, %33 : vector<16x128xf32>
    %231 = arith.addf %226, %230 : vector<16x128xf32>
    %232 = arith.index_cast %222 : i32 to index
    %233 = memref.load %arg5[%232] : memref<48xf32, #tpu.memory_space<smem>>
    %234 = vector.broadcast %233 : f32 to vector<16x128xf32>
    %235 = arith.addf %231, %234 : vector<16x128xf32>
    %236 = arith.minimumf %205, %235 : vector<16x128xf32>
    %c6_i32 = arith.constant 6 : i32
    %c2_i32_27 = arith.constant 2 : i32
    %237 = arith.muli %c2_i32_27, %c6_i32 : i32
    %238 = arith.addi %54, %237 : i32
    %239 = arith.index_cast %238 : i32 to index
    %240 = memref.load %arg3[%239] : memref<48xf32, #tpu.memory_space<smem>>
    %241 = vector.broadcast %240 : f32 to vector<16x128xf32>
    %242 = arith.mulf %241, %28 : vector<16x128xf32>
    %243 = arith.index_cast %238 : i32 to index
    %244 = memref.load %arg4[%243] : memref<48xf32, #tpu.memory_space<smem>>
    %245 = vector.broadcast %244 : f32 to vector<16x128xf32>
    %246 = arith.mulf %245, %33 : vector<16x128xf32>
    %247 = arith.addf %242, %246 : vector<16x128xf32>
    %248 = arith.index_cast %238 : i32 to index
    %249 = memref.load %arg5[%248] : memref<48xf32, #tpu.memory_space<smem>>
    %250 = vector.broadcast %249 : f32 to vector<16x128xf32>
    %251 = arith.addf %247, %250 : vector<16x128xf32>
    %252 = arith.minimumf %221, %251 : vector<16x128xf32>
    %c1_i32_28 = arith.constant 1 : i32
    %253 = arith.addi %238, %c1_i32_28 : i32
    %254 = arith.index_cast %253 : i32 to index
    %255 = memref.load %arg3[%254] : memref<48xf32, #tpu.memory_space<smem>>
    %256 = vector.broadcast %255 : f32 to vector<16x128xf32>
    %257 = arith.mulf %256, %28 : vector<16x128xf32>
    %258 = arith.index_cast %253 : i32 to index
    %259 = memref.load %arg4[%258] : memref<48xf32, #tpu.memory_space<smem>>
    %260 = vector.broadcast %259 : f32 to vector<16x128xf32>
    %261 = arith.mulf %260, %33 : vector<16x128xf32>
    %262 = arith.addf %257, %261 : vector<16x128xf32>
    %263 = arith.index_cast %253 : i32 to index
    %264 = memref.load %arg5[%263] : memref<48xf32, #tpu.memory_space<smem>>
    %265 = vector.broadcast %264 : f32 to vector<16x128xf32>
    %266 = arith.addf %262, %265 : vector<16x128xf32>
    %267 = arith.minimumf %236, %266 : vector<16x128xf32>
    %c7_i32 = arith.constant 7 : i32
    %c2_i32_29 = arith.constant 2 : i32
    %268 = arith.muli %c2_i32_29, %c7_i32 : i32
    %269 = arith.addi %54, %268 : i32
    %270 = arith.index_cast %269 : i32 to index
    %271 = memref.load %arg3[%270] : memref<48xf32, #tpu.memory_space<smem>>
    %272 = vector.broadcast %271 : f32 to vector<16x128xf32>
    %273 = arith.mulf %272, %28 : vector<16x128xf32>
    %274 = arith.index_cast %269 : i32 to index
    %275 = memref.load %arg4[%274] : memref<48xf32, #tpu.memory_space<smem>>
    %276 = vector.broadcast %275 : f32 to vector<16x128xf32>
    %277 = arith.mulf %276, %33 : vector<16x128xf32>
    %278 = arith.addf %273, %277 : vector<16x128xf32>
    %279 = arith.index_cast %269 : i32 to index
    %280 = memref.load %arg5[%279] : memref<48xf32, #tpu.memory_space<smem>>
    %281 = vector.broadcast %280 : f32 to vector<16x128xf32>
    %282 = arith.addf %278, %281 : vector<16x128xf32>
    %283 = arith.minimumf %252, %282 : vector<16x128xf32>
    %c1_i32_30 = arith.constant 1 : i32
    %284 = arith.addi %269, %c1_i32_30 : i32
    %285 = arith.index_cast %284 : i32 to index
    %286 = memref.load %arg3[%285] : memref<48xf32, #tpu.memory_space<smem>>
    %287 = vector.broadcast %286 : f32 to vector<16x128xf32>
    %288 = arith.mulf %287, %28 : vector<16x128xf32>
    %289 = arith.index_cast %284 : i32 to index
    %290 = memref.load %arg4[%289] : memref<48xf32, #tpu.memory_space<smem>>
    %291 = vector.broadcast %290 : f32 to vector<16x128xf32>
    %292 = arith.mulf %291, %33 : vector<16x128xf32>
    %293 = arith.addf %288, %292 : vector<16x128xf32>
    %294 = arith.index_cast %284 : i32 to index
    %295 = memref.load %arg5[%294] : memref<48xf32, #tpu.memory_space<smem>>
    %296 = vector.broadcast %295 : f32 to vector<16x128xf32>
    %297 = arith.addf %293, %296 : vector<16x128xf32>
    %298 = arith.minimumf %267, %297 : vector<16x128xf32>
    %c7_i32_31 = arith.constant 7 : i32
    %299 = arith.minimumf %283, %298 : vector<16x128xf32>
    %300 = arith.addf %36, %299 : vector<16x128xf32>
    %301 = vector.broadcast %41 : f32 to vector<16x128xf32>
    %302 = arith.cmpf oge, %28, %301 : vector<16x128xf32>
    %303 = vector.broadcast %45 : f32 to vector<16x128xf32>
    %304 = arith.cmpf oge, %33, %303 : vector<16x128xf32>
    %305 = arith.andi %302, %304 : vector<16x128xi1>
    %306 = vector.broadcast %49 : f32 to vector<16x128xf32>
    %307 = arith.cmpf ole, %28, %306 : vector<16x128xf32>
    %308 = arith.andi %305, %307 : vector<16x128xi1>
    %309 = vector.broadcast %53 : f32 to vector<16x128xf32>
    %310 = arith.cmpf ole, %33, %309 : vector<16x128xf32>
    %311 = arith.andi %308, %310 : vector<16x128xi1>
    %cst_32 = arith.constant 0.000000e+00 : f32
    %312 = vector.broadcast %cst_32 : f32 to vector<16x128xf32>
    %313 = arith.select %311, %312, %300 : vector<16x128xi1>, vector<16x128xf32>
    %314 = arith.addf %37, %313 : vector<16x128xf32>
    %c1_i32_33 = arith.constant 1 : i32
    %c4_i32_34 = arith.constant 4 : i32
    %315 = arith.muli %c4_i32_34, %c1_i32_33 : i32
    %c0_i32_35 = arith.constant 0 : i32
    %316 = arith.addi %315, %c0_i32_35 : i32
    %317 = arith.index_cast %316 : i32 to index
    %318 = memref.load %arg2[%317] : memref<12xf32, #tpu.memory_space<smem>>
    %c4_i32_36 = arith.constant 4 : i32
    %319 = arith.muli %c4_i32_36, %c1_i32_33 : i32
    %c1_i32_37 = arith.constant 1 : i32
    %320 = arith.addi %319, %c1_i32_37 : i32
    %321 = arith.index_cast %320 : i32 to index
    %322 = memref.load %arg2[%321] : memref<12xf32, #tpu.memory_space<smem>>
    %c4_i32_38 = arith.constant 4 : i32
    %323 = arith.muli %c4_i32_38, %c1_i32_33 : i32
    %c2_i32_39 = arith.constant 2 : i32
    %324 = arith.addi %323, %c2_i32_39 : i32
    %325 = arith.index_cast %324 : i32 to index
    %326 = memref.load %arg2[%325] : memref<12xf32, #tpu.memory_space<smem>>
    %c4_i32_40 = arith.constant 4 : i32
    %327 = arith.muli %c4_i32_40, %c1_i32_33 : i32
    %c3_i32_41 = arith.constant 3 : i32
    %328 = arith.addi %327, %c3_i32_41 : i32
    %329 = arith.index_cast %328 : i32 to index
    %330 = memref.load %arg2[%329] : memref<12xf32, #tpu.memory_space<smem>>
    %c16_i32_42 = arith.constant 16 : i32
    %331 = arith.muli %c1_i32_33, %c16_i32_42 : i32
    %332 = arith.index_cast %331 : i32 to index
    %333 = memref.load %arg3[%332] : memref<48xf32, #tpu.memory_space<smem>>
    %334 = vector.broadcast %333 : f32 to vector<16x128xf32>
    %335 = arith.mulf %334, %28 : vector<16x128xf32>
    %336 = arith.index_cast %331 : i32 to index
    %337 = memref.load %arg4[%336] : memref<48xf32, #tpu.memory_space<smem>>
    %338 = vector.broadcast %337 : f32 to vector<16x128xf32>
    %339 = arith.mulf %338, %33 : vector<16x128xf32>
    %340 = arith.addf %335, %339 : vector<16x128xf32>
    %341 = arith.index_cast %331 : i32 to index
    %342 = memref.load %arg5[%341] : memref<48xf32, #tpu.memory_space<smem>>
    %343 = vector.broadcast %342 : f32 to vector<16x128xf32>
    %344 = arith.addf %340, %343 : vector<16x128xf32>
    %c1_i32_43 = arith.constant 1 : i32
    %345 = arith.addi %331, %c1_i32_43 : i32
    %346 = arith.index_cast %345 : i32 to index
    %347 = memref.load %arg3[%346] : memref<48xf32, #tpu.memory_space<smem>>
    %348 = vector.broadcast %347 : f32 to vector<16x128xf32>
    %349 = arith.mulf %348, %28 : vector<16x128xf32>
    %350 = arith.index_cast %345 : i32 to index
    %351 = memref.load %arg4[%350] : memref<48xf32, #tpu.memory_space<smem>>
    %352 = vector.broadcast %351 : f32 to vector<16x128xf32>
    %353 = arith.mulf %352, %33 : vector<16x128xf32>
    %354 = arith.addf %349, %353 : vector<16x128xf32>
    %355 = arith.index_cast %345 : i32 to index
    %356 = memref.load %arg5[%355] : memref<48xf32, #tpu.memory_space<smem>>
    %357 = vector.broadcast %356 : f32 to vector<16x128xf32>
    %358 = arith.addf %354, %357 : vector<16x128xf32>
    %c1_i32_44 = arith.constant 1 : i32
    %c2_i32_45 = arith.constant 2 : i32
    %359 = arith.muli %c2_i32_45, %c1_i32_44 : i32
    %360 = arith.addi %331, %359 : i32
    %361 = arith.index_cast %360 : i32 to index
    %362 = memref.load %arg3[%361] : memref<48xf32, #tpu.memory_space<smem>>
    %363 = vector.broadcast %362 : f32 to vector<16x128xf32>
    %364 = arith.mulf %363, %28 : vector<16x128xf32>
    %365 = arith.index_cast %360 : i32 to index
    %366 = memref.load %arg4[%365] : memref<48xf32, #tpu.memory_space<smem>>
    %367 = vector.broadcast %366 : f32 to vector<16x128xf32>
    %368 = arith.mulf %367, %33 : vector<16x128xf32>
    %369 = arith.addf %364, %368 : vector<16x128xf32>
    %370 = arith.index_cast %360 : i32 to index
    %371 = memref.load %arg5[%370] : memref<48xf32, #tpu.memory_space<smem>>
    %372 = vector.broadcast %371 : f32 to vector<16x128xf32>
    %373 = arith.addf %369, %372 : vector<16x128xf32>
    %374 = arith.minimumf %344, %373 : vector<16x128xf32>
    %c1_i32_46 = arith.constant 1 : i32
    %375 = arith.addi %360, %c1_i32_46 : i32
    %376 = arith.index_cast %375 : i32 to index
    %377 = memref.load %arg3[%376] : memref<48xf32, #tpu.memory_space<smem>>
    %378 = vector.broadcast %377 : f32 to vector<16x128xf32>
    %379 = arith.mulf %378, %28 : vector<16x128xf32>
    %380 = arith.index_cast %375 : i32 to index
    %381 = memref.load %arg4[%380] : memref<48xf32, #tpu.memory_space<smem>>
    %382 = vector.broadcast %381 : f32 to vector<16x128xf32>
    %383 = arith.mulf %382, %33 : vector<16x128xf32>
    %384 = arith.addf %379, %383 : vector<16x128xf32>
    %385 = arith.index_cast %375 : i32 to index
    %386 = memref.load %arg5[%385] : memref<48xf32, #tpu.memory_space<smem>>
    %387 = vector.broadcast %386 : f32 to vector<16x128xf32>
    %388 = arith.addf %384, %387 : vector<16x128xf32>
    %389 = arith.minimumf %358, %388 : vector<16x128xf32>
    %c2_i32_47 = arith.constant 2 : i32
    %c2_i32_48 = arith.constant 2 : i32
    %390 = arith.muli %c2_i32_48, %c2_i32_47 : i32
    %391 = arith.addi %331, %390 : i32
    %392 = arith.index_cast %391 : i32 to index
    %393 = memref.load %arg3[%392] : memref<48xf32, #tpu.memory_space<smem>>
    %394 = vector.broadcast %393 : f32 to vector<16x128xf32>
    %395 = arith.mulf %394, %28 : vector<16x128xf32>
    %396 = arith.index_cast %391 : i32 to index
    %397 = memref.load %arg4[%396] : memref<48xf32, #tpu.memory_space<smem>>
    %398 = vector.broadcast %397 : f32 to vector<16x128xf32>
    %399 = arith.mulf %398, %33 : vector<16x128xf32>
    %400 = arith.addf %395, %399 : vector<16x128xf32>
    %401 = arith.index_cast %391 : i32 to index
    %402 = memref.load %arg5[%401] : memref<48xf32, #tpu.memory_space<smem>>
    %403 = vector.broadcast %402 : f32 to vector<16x128xf32>
    %404 = arith.addf %400, %403 : vector<16x128xf32>
    %405 = arith.minimumf %374, %404 : vector<16x128xf32>
    %c1_i32_49 = arith.constant 1 : i32
    %406 = arith.addi %391, %c1_i32_49 : i32
    %407 = arith.index_cast %406 : i32 to index
    %408 = memref.load %arg3[%407] : memref<48xf32, #tpu.memory_space<smem>>
    %409 = vector.broadcast %408 : f32 to vector<16x128xf32>
    %410 = arith.mulf %409, %28 : vector<16x128xf32>
    %411 = arith.index_cast %406 : i32 to index
    %412 = memref.load %arg4[%411] : memref<48xf32, #tpu.memory_space<smem>>
    %413 = vector.broadcast %412 : f32 to vector<16x128xf32>
    %414 = arith.mulf %413, %33 : vector<16x128xf32>
    %415 = arith.addf %410, %414 : vector<16x128xf32>
    %416 = arith.index_cast %406 : i32 to index
    %417 = memref.load %arg5[%416] : memref<48xf32, #tpu.memory_space<smem>>
    %418 = vector.broadcast %417 : f32 to vector<16x128xf32>
    %419 = arith.addf %415, %418 : vector<16x128xf32>
    %420 = arith.minimumf %389, %419 : vector<16x128xf32>
    %c3_i32_50 = arith.constant 3 : i32
    %c2_i32_51 = arith.constant 2 : i32
    %421 = arith.muli %c2_i32_51, %c3_i32_50 : i32
    %422 = arith.addi %331, %421 : i32
    %423 = arith.index_cast %422 : i32 to index
    %424 = memref.load %arg3[%423] : memref<48xf32, #tpu.memory_space<smem>>
    %425 = vector.broadcast %424 : f32 to vector<16x128xf32>
    %426 = arith.mulf %425, %28 : vector<16x128xf32>
    %427 = arith.index_cast %422 : i32 to index
    %428 = memref.load %arg4[%427] : memref<48xf32, #tpu.memory_space<smem>>
    %429 = vector.broadcast %428 : f32 to vector<16x128xf32>
    %430 = arith.mulf %429, %33 : vector<16x128xf32>
    %431 = arith.addf %426, %430 : vector<16x128xf32>
    %432 = arith.index_cast %422 : i32 to index
    %433 = memref.load %arg5[%432] : memref<48xf32, #tpu.memory_space<smem>>
    %434 = vector.broadcast %433 : f32 to vector<16x128xf32>
    %435 = arith.addf %431, %434 : vector<16x128xf32>
    %436 = arith.minimumf %405, %435 : vector<16x128xf32>
    %c1_i32_52 = arith.constant 1 : i32
    %437 = arith.addi %422, %c1_i32_52 : i32
    %438 = arith.index_cast %437 : i32 to index
    %439 = memref.load %arg3[%438] : memref<48xf32, #tpu.memory_space<smem>>
    %440 = vector.broadcast %439 : f32 to vector<16x128xf32>
    %441 = arith.mulf %440, %28 : vector<16x128xf32>
    %442 = arith.index_cast %437 : i32 to index
    %443 = memref.load %arg4[%442] : memref<48xf32, #tpu.memory_space<smem>>
    %444 = vector.broadcast %443 : f32 to vector<16x128xf32>
    %445 = arith.mulf %444, %33 : vector<16x128xf32>
    %446 = arith.addf %441, %445 : vector<16x128xf32>
    %447 = arith.index_cast %437 : i32 to index
    %448 = memref.load %arg5[%447] : memref<48xf32, #tpu.memory_space<smem>>
    %449 = vector.broadcast %448 : f32 to vector<16x128xf32>
    %450 = arith.addf %446, %449 : vector<16x128xf32>
    %451 = arith.minimumf %420, %450 : vector<16x128xf32>
    %c4_i32_53 = arith.constant 4 : i32
    %c2_i32_54 = arith.constant 2 : i32
    %452 = arith.muli %c2_i32_54, %c4_i32_53 : i32
    %453 = arith.addi %331, %452 : i32
    %454 = arith.index_cast %453 : i32 to index
    %455 = memref.load %arg3[%454] : memref<48xf32, #tpu.memory_space<smem>>
    %456 = vector.broadcast %455 : f32 to vector<16x128xf32>
    %457 = arith.mulf %456, %28 : vector<16x128xf32>
    %458 = arith.index_cast %453 : i32 to index
    %459 = memref.load %arg4[%458] : memref<48xf32, #tpu.memory_space<smem>>
    %460 = vector.broadcast %459 : f32 to vector<16x128xf32>
    %461 = arith.mulf %460, %33 : vector<16x128xf32>
    %462 = arith.addf %457, %461 : vector<16x128xf32>
    %463 = arith.index_cast %453 : i32 to index
    %464 = memref.load %arg5[%463] : memref<48xf32, #tpu.memory_space<smem>>
    %465 = vector.broadcast %464 : f32 to vector<16x128xf32>
    %466 = arith.addf %462, %465 : vector<16x128xf32>
    %467 = arith.minimumf %436, %466 : vector<16x128xf32>
    %c1_i32_55 = arith.constant 1 : i32
    %468 = arith.addi %453, %c1_i32_55 : i32
    %469 = arith.index_cast %468 : i32 to index
    %470 = memref.load %arg3[%469] : memref<48xf32, #tpu.memory_space<smem>>
    %471 = vector.broadcast %470 : f32 to vector<16x128xf32>
    %472 = arith.mulf %471, %28 : vector<16x128xf32>
    %473 = arith.index_cast %468 : i32 to index
    %474 = memref.load %arg4[%473] : memref<48xf32, #tpu.memory_space<smem>>
    %475 = vector.broadcast %474 : f32 to vector<16x128xf32>
    %476 = arith.mulf %475, %33 : vector<16x128xf32>
    %477 = arith.addf %472, %476 : vector<16x128xf32>
    %478 = arith.index_cast %468 : i32 to index
    %479 = memref.load %arg5[%478] : memref<48xf32, #tpu.memory_space<smem>>
    %480 = vector.broadcast %479 : f32 to vector<16x128xf32>
    %481 = arith.addf %477, %480 : vector<16x128xf32>
    %482 = arith.minimumf %451, %481 : vector<16x128xf32>
    %c5_i32_56 = arith.constant 5 : i32
    %c2_i32_57 = arith.constant 2 : i32
    %483 = arith.muli %c2_i32_57, %c5_i32_56 : i32
    %484 = arith.addi %331, %483 : i32
    %485 = arith.index_cast %484 : i32 to index
    %486 = memref.load %arg3[%485] : memref<48xf32, #tpu.memory_space<smem>>
    %487 = vector.broadcast %486 : f32 to vector<16x128xf32>
    %488 = arith.mulf %487, %28 : vector<16x128xf32>
    %489 = arith.index_cast %484 : i32 to index
    %490 = memref.load %arg4[%489] : memref<48xf32, #tpu.memory_space<smem>>
    %491 = vector.broadcast %490 : f32 to vector<16x128xf32>
    %492 = arith.mulf %491, %33 : vector<16x128xf32>
    %493 = arith.addf %488, %492 : vector<16x128xf32>
    %494 = arith.index_cast %484 : i32 to index
    %495 = memref.load %arg5[%494] : memref<48xf32, #tpu.memory_space<smem>>
    %496 = vector.broadcast %495 : f32 to vector<16x128xf32>
    %497 = arith.addf %493, %496 : vector<16x128xf32>
    %498 = arith.minimumf %467, %497 : vector<16x128xf32>
    %c1_i32_58 = arith.constant 1 : i32
    %499 = arith.addi %484, %c1_i32_58 : i32
    %500 = arith.index_cast %499 : i32 to index
    %501 = memref.load %arg3[%500] : memref<48xf32, #tpu.memory_space<smem>>
    %502 = vector.broadcast %501 : f32 to vector<16x128xf32>
    %503 = arith.mulf %502, %28 : vector<16x128xf32>
    %504 = arith.index_cast %499 : i32 to index
    %505 = memref.load %arg4[%504] : memref<48xf32, #tpu.memory_space<smem>>
    %506 = vector.broadcast %505 : f32 to vector<16x128xf32>
    %507 = arith.mulf %506, %33 : vector<16x128xf32>
    %508 = arith.addf %503, %507 : vector<16x128xf32>
    %509 = arith.index_cast %499 : i32 to index
    %510 = memref.load %arg5[%509] : memref<48xf32, #tpu.memory_space<smem>>
    %511 = vector.broadcast %510 : f32 to vector<16x128xf32>
    %512 = arith.addf %508, %511 : vector<16x128xf32>
    %513 = arith.minimumf %482, %512 : vector<16x128xf32>
    %c6_i32_59 = arith.constant 6 : i32
    %c2_i32_60 = arith.constant 2 : i32
    %514 = arith.muli %c2_i32_60, %c6_i32_59 : i32
    %515 = arith.addi %331, %514 : i32
    %516 = arith.index_cast %515 : i32 to index
    %517 = memref.load %arg3[%516] : memref<48xf32, #tpu.memory_space<smem>>
    %518 = vector.broadcast %517 : f32 to vector<16x128xf32>
    %519 = arith.mulf %518, %28 : vector<16x128xf32>
    %520 = arith.index_cast %515 : i32 to index
    %521 = memref.load %arg4[%520] : memref<48xf32, #tpu.memory_space<smem>>
    %522 = vector.broadcast %521 : f32 to vector<16x128xf32>
    %523 = arith.mulf %522, %33 : vector<16x128xf32>
    %524 = arith.addf %519, %523 : vector<16x128xf32>
    %525 = arith.index_cast %515 : i32 to index
    %526 = memref.load %arg5[%525] : memref<48xf32, #tpu.memory_space<smem>>
    %527 = vector.broadcast %526 : f32 to vector<16x128xf32>
    %528 = arith.addf %524, %527 : vector<16x128xf32>
    %529 = arith.minimumf %498, %528 : vector<16x128xf32>
    %c1_i32_61 = arith.constant 1 : i32
    %530 = arith.addi %515, %c1_i32_61 : i32
    %531 = arith.index_cast %530 : i32 to index
    %532 = memref.load %arg3[%531] : memref<48xf32, #tpu.memory_space<smem>>
    %533 = vector.broadcast %532 : f32 to vector<16x128xf32>
    %534 = arith.mulf %533, %28 : vector<16x128xf32>
    %535 = arith.index_cast %530 : i32 to index
    %536 = memref.load %arg4[%535] : memref<48xf32, #tpu.memory_space<smem>>
    %537 = vector.broadcast %536 : f32 to vector<16x128xf32>
    %538 = arith.mulf %537, %33 : vector<16x128xf32>
    %539 = arith.addf %534, %538 : vector<16x128xf32>
    %540 = arith.index_cast %530 : i32 to index
    %541 = memref.load %arg5[%540] : memref<48xf32, #tpu.memory_space<smem>>
    %542 = vector.broadcast %541 : f32 to vector<16x128xf32>
    %543 = arith.addf %539, %542 : vector<16x128xf32>
    %544 = arith.minimumf %513, %543 : vector<16x128xf32>
    %c7_i32_62 = arith.constant 7 : i32
    %c2_i32_63 = arith.constant 2 : i32
    %545 = arith.muli %c2_i32_63, %c7_i32_62 : i32
    %546 = arith.addi %331, %545 : i32
    %547 = arith.index_cast %546 : i32 to index
    %548 = memref.load %arg3[%547] : memref<48xf32, #tpu.memory_space<smem>>
    %549 = vector.broadcast %548 : f32 to vector<16x128xf32>
    %550 = arith.mulf %549, %28 : vector<16x128xf32>
    %551 = arith.index_cast %546 : i32 to index
    %552 = memref.load %arg4[%551] : memref<48xf32, #tpu.memory_space<smem>>
    %553 = vector.broadcast %552 : f32 to vector<16x128xf32>
    %554 = arith.mulf %553, %33 : vector<16x128xf32>
    %555 = arith.addf %550, %554 : vector<16x128xf32>
    %556 = arith.index_cast %546 : i32 to index
    %557 = memref.load %arg5[%556] : memref<48xf32, #tpu.memory_space<smem>>
    %558 = vector.broadcast %557 : f32 to vector<16x128xf32>
    %559 = arith.addf %555, %558 : vector<16x128xf32>
    %560 = arith.minimumf %529, %559 : vector<16x128xf32>
    %c1_i32_64 = arith.constant 1 : i32
    %561 = arith.addi %546, %c1_i32_64 : i32
    %562 = arith.index_cast %561 : i32 to index
    %563 = memref.load %arg3[%562] : memref<48xf32, #tpu.memory_space<smem>>
    %564 = vector.broadcast %563 : f32 to vector<16x128xf32>
    %565 = arith.mulf %564, %28 : vector<16x128xf32>
    %566 = arith.index_cast %561 : i32 to index
    %567 = memref.load %arg4[%566] : memref<48xf32, #tpu.memory_space<smem>>
    %568 = vector.broadcast %567 : f32 to vector<16x128xf32>
    %569 = arith.mulf %568, %33 : vector<16x128xf32>
    %570 = arith.addf %565, %569 : vector<16x128xf32>
    %571 = arith.index_cast %561 : i32 to index
    %572 = memref.load %arg5[%571] : memref<48xf32, #tpu.memory_space<smem>>
    %573 = vector.broadcast %572 : f32 to vector<16x128xf32>
    %574 = arith.addf %570, %573 : vector<16x128xf32>
    %575 = arith.minimumf %544, %574 : vector<16x128xf32>
    %c7_i32_65 = arith.constant 7 : i32
    %576 = arith.minimumf %560, %575 : vector<16x128xf32>
    %577 = arith.addf %36, %576 : vector<16x128xf32>
    %578 = vector.broadcast %318 : f32 to vector<16x128xf32>
    %579 = arith.cmpf oge, %28, %578 : vector<16x128xf32>
    %580 = vector.broadcast %322 : f32 to vector<16x128xf32>
    %581 = arith.cmpf oge, %33, %580 : vector<16x128xf32>
    %582 = arith.andi %579, %581 : vector<16x128xi1>
    %583 = vector.broadcast %326 : f32 to vector<16x128xf32>
    %584 = arith.cmpf ole, %28, %583 : vector<16x128xf32>
    %585 = arith.andi %582, %584 : vector<16x128xi1>
    %586 = vector.broadcast %330 : f32 to vector<16x128xf32>
    %587 = arith.cmpf ole, %33, %586 : vector<16x128xf32>
    %588 = arith.andi %585, %587 : vector<16x128xi1>
    %cst_66 = arith.constant 0.000000e+00 : f32
    %589 = vector.broadcast %cst_66 : f32 to vector<16x128xf32>
    %590 = arith.select %588, %589, %577 : vector<16x128xi1>, vector<16x128xf32>
    %591 = arith.addf %314, %590 : vector<16x128xf32>
    %c2_i32_67 = arith.constant 2 : i32
    %c4_i32_68 = arith.constant 4 : i32
    %592 = arith.muli %c4_i32_68, %c2_i32_67 : i32
    %c0_i32_69 = arith.constant 0 : i32
    %593 = arith.addi %592, %c0_i32_69 : i32
    %594 = arith.index_cast %593 : i32 to index
    %595 = memref.load %arg2[%594] : memref<12xf32, #tpu.memory_space<smem>>
    %c4_i32_70 = arith.constant 4 : i32
    %596 = arith.muli %c4_i32_70, %c2_i32_67 : i32
    %c1_i32_71 = arith.constant 1 : i32
    %597 = arith.addi %596, %c1_i32_71 : i32
    %598 = arith.index_cast %597 : i32 to index
    %599 = memref.load %arg2[%598] : memref<12xf32, #tpu.memory_space<smem>>
    %c4_i32_72 = arith.constant 4 : i32
    %600 = arith.muli %c4_i32_72, %c2_i32_67 : i32
    %c2_i32_73 = arith.constant 2 : i32
    %601 = arith.addi %600, %c2_i32_73 : i32
    %602 = arith.index_cast %601 : i32 to index
    %603 = memref.load %arg2[%602] : memref<12xf32, #tpu.memory_space<smem>>
    %c4_i32_74 = arith.constant 4 : i32
    %604 = arith.muli %c4_i32_74, %c2_i32_67 : i32
    %c3_i32_75 = arith.constant 3 : i32
    %605 = arith.addi %604, %c3_i32_75 : i32
    %606 = arith.index_cast %605 : i32 to index
    %607 = memref.load %arg2[%606] : memref<12xf32, #tpu.memory_space<smem>>
    %c16_i32_76 = arith.constant 16 : i32
    %608 = arith.muli %c2_i32_67, %c16_i32_76 : i32
    %609 = arith.index_cast %608 : i32 to index
    %610 = memref.load %arg3[%609] : memref<48xf32, #tpu.memory_space<smem>>
    %611 = vector.broadcast %610 : f32 to vector<16x128xf32>
    %612 = arith.mulf %611, %28 : vector<16x128xf32>
    %613 = arith.index_cast %608 : i32 to index
    %614 = memref.load %arg4[%613] : memref<48xf32, #tpu.memory_space<smem>>
    %615 = vector.broadcast %614 : f32 to vector<16x128xf32>
    %616 = arith.mulf %615, %33 : vector<16x128xf32>
    %617 = arith.addf %612, %616 : vector<16x128xf32>
    %618 = arith.index_cast %608 : i32 to index
    %619 = memref.load %arg5[%618] : memref<48xf32, #tpu.memory_space<smem>>
    %620 = vector.broadcast %619 : f32 to vector<16x128xf32>
    %621 = arith.addf %617, %620 : vector<16x128xf32>
    %c1_i32_77 = arith.constant 1 : i32
    %622 = arith.addi %608, %c1_i32_77 : i32
    %623 = arith.index_cast %622 : i32 to index
    %624 = memref.load %arg3[%623] : memref<48xf32, #tpu.memory_space<smem>>
    %625 = vector.broadcast %624 : f32 to vector<16x128xf32>
    %626 = arith.mulf %625, %28 : vector<16x128xf32>
    %627 = arith.index_cast %622 : i32 to index
    %628 = memref.load %arg4[%627] : memref<48xf32, #tpu.memory_space<smem>>
    %629 = vector.broadcast %628 : f32 to vector<16x128xf32>
    %630 = arith.mulf %629, %33 : vector<16x128xf32>
    %631 = arith.addf %626, %630 : vector<16x128xf32>
    %632 = arith.index_cast %622 : i32 to index
    %633 = memref.load %arg5[%632] : memref<48xf32, #tpu.memory_space<smem>>
    %634 = vector.broadcast %633 : f32 to vector<16x128xf32>
    %635 = arith.addf %631, %634 : vector<16x128xf32>
    %c1_i32_78 = arith.constant 1 : i32
    %c2_i32_79 = arith.constant 2 : i32
    %636 = arith.muli %c2_i32_79, %c1_i32_78 : i32
    %637 = arith.addi %608, %636 : i32
    %638 = arith.index_cast %637 : i32 to index
    %639 = memref.load %arg3[%638] : memref<48xf32, #tpu.memory_space<smem>>
    %640 = vector.broadcast %639 : f32 to vector<16x128xf32>
    %641 = arith.mulf %640, %28 : vector<16x128xf32>
    %642 = arith.index_cast %637 : i32 to index
    %643 = memref.load %arg4[%642] : memref<48xf32, #tpu.memory_space<smem>>
    %644 = vector.broadcast %643 : f32 to vector<16x128xf32>
    %645 = arith.mulf %644, %33 : vector<16x128xf32>
    %646 = arith.addf %641, %645 : vector<16x128xf32>
    %647 = arith.index_cast %637 : i32 to index
    %648 = memref.load %arg5[%647] : memref<48xf32, #tpu.memory_space<smem>>
    %649 = vector.broadcast %648 : f32 to vector<16x128xf32>
    %650 = arith.addf %646, %649 : vector<16x128xf32>
    %651 = arith.minimumf %621, %650 : vector<16x128xf32>
    %c1_i32_80 = arith.constant 1 : i32
    %652 = arith.addi %637, %c1_i32_80 : i32
    %653 = arith.index_cast %652 : i32 to index
    %654 = memref.load %arg3[%653] : memref<48xf32, #tpu.memory_space<smem>>
    %655 = vector.broadcast %654 : f32 to vector<16x128xf32>
    %656 = arith.mulf %655, %28 : vector<16x128xf32>
    %657 = arith.index_cast %652 : i32 to index
    %658 = memref.load %arg4[%657] : memref<48xf32, #tpu.memory_space<smem>>
    %659 = vector.broadcast %658 : f32 to vector<16x128xf32>
    %660 = arith.mulf %659, %33 : vector<16x128xf32>
    %661 = arith.addf %656, %660 : vector<16x128xf32>
    %662 = arith.index_cast %652 : i32 to index
    %663 = memref.load %arg5[%662] : memref<48xf32, #tpu.memory_space<smem>>
    %664 = vector.broadcast %663 : f32 to vector<16x128xf32>
    %665 = arith.addf %661, %664 : vector<16x128xf32>
    %666 = arith.minimumf %635, %665 : vector<16x128xf32>
    %c2_i32_81 = arith.constant 2 : i32
    %c2_i32_82 = arith.constant 2 : i32
    %667 = arith.muli %c2_i32_82, %c2_i32_81 : i32
    %668 = arith.addi %608, %667 : i32
    %669 = arith.index_cast %668 : i32 to index
    %670 = memref.load %arg3[%669] : memref<48xf32, #tpu.memory_space<smem>>
    %671 = vector.broadcast %670 : f32 to vector<16x128xf32>
    %672 = arith.mulf %671, %28 : vector<16x128xf32>
    %673 = arith.index_cast %668 : i32 to index
    %674 = memref.load %arg4[%673] : memref<48xf32, #tpu.memory_space<smem>>
    %675 = vector.broadcast %674 : f32 to vector<16x128xf32>
    %676 = arith.mulf %675, %33 : vector<16x128xf32>
    %677 = arith.addf %672, %676 : vector<16x128xf32>
    %678 = arith.index_cast %668 : i32 to index
    %679 = memref.load %arg5[%678] : memref<48xf32, #tpu.memory_space<smem>>
    %680 = vector.broadcast %679 : f32 to vector<16x128xf32>
    %681 = arith.addf %677, %680 : vector<16x128xf32>
    %682 = arith.minimumf %651, %681 : vector<16x128xf32>
    %c1_i32_83 = arith.constant 1 : i32
    %683 = arith.addi %668, %c1_i32_83 : i32
    %684 = arith.index_cast %683 : i32 to index
    %685 = memref.load %arg3[%684] : memref<48xf32, #tpu.memory_space<smem>>
    %686 = vector.broadcast %685 : f32 to vector<16x128xf32>
    %687 = arith.mulf %686, %28 : vector<16x128xf32>
    %688 = arith.index_cast %683 : i32 to index
    %689 = memref.load %arg4[%688] : memref<48xf32, #tpu.memory_space<smem>>
    %690 = vector.broadcast %689 : f32 to vector<16x128xf32>
    %691 = arith.mulf %690, %33 : vector<16x128xf32>
    %692 = arith.addf %687, %691 : vector<16x128xf32>
    %693 = arith.index_cast %683 : i32 to index
    %694 = memref.load %arg5[%693] : memref<48xf32, #tpu.memory_space<smem>>
    %695 = vector.broadcast %694 : f32 to vector<16x128xf32>
    %696 = arith.addf %692, %695 : vector<16x128xf32>
    %697 = arith.minimumf %666, %696 : vector<16x128xf32>
    %c3_i32_84 = arith.constant 3 : i32
    %c2_i32_85 = arith.constant 2 : i32
    %698 = arith.muli %c2_i32_85, %c3_i32_84 : i32
    %699 = arith.addi %608, %698 : i32
    %700 = arith.index_cast %699 : i32 to index
    %701 = memref.load %arg3[%700] : memref<48xf32, #tpu.memory_space<smem>>
    %702 = vector.broadcast %701 : f32 to vector<16x128xf32>
    %703 = arith.mulf %702, %28 : vector<16x128xf32>
    %704 = arith.index_cast %699 : i32 to index
    %705 = memref.load %arg4[%704] : memref<48xf32, #tpu.memory_space<smem>>
    %706 = vector.broadcast %705 : f32 to vector<16x128xf32>
    %707 = arith.mulf %706, %33 : vector<16x128xf32>
    %708 = arith.addf %703, %707 : vector<16x128xf32>
    %709 = arith.index_cast %699 : i32 to index
    %710 = memref.load %arg5[%709] : memref<48xf32, #tpu.memory_space<smem>>
    %711 = vector.broadcast %710 : f32 to vector<16x128xf32>
    %712 = arith.addf %708, %711 : vector<16x128xf32>
    %713 = arith.minimumf %682, %712 : vector<16x128xf32>
    %c1_i32_86 = arith.constant 1 : i32
    %714 = arith.addi %699, %c1_i32_86 : i32
    %715 = arith.index_cast %714 : i32 to index
    %716 = memref.load %arg3[%715] : memref<48xf32, #tpu.memory_space<smem>>
    %717 = vector.broadcast %716 : f32 to vector<16x128xf32>
    %718 = arith.mulf %717, %28 : vector<16x128xf32>
    %719 = arith.index_cast %714 : i32 to index
    %720 = memref.load %arg4[%719] : memref<48xf32, #tpu.memory_space<smem>>
    %721 = vector.broadcast %720 : f32 to vector<16x128xf32>
    %722 = arith.mulf %721, %33 : vector<16x128xf32>
    %723 = arith.addf %718, %722 : vector<16x128xf32>
    %724 = arith.index_cast %714 : i32 to index
    %725 = memref.load %arg5[%724] : memref<48xf32, #tpu.memory_space<smem>>
    %726 = vector.broadcast %725 : f32 to vector<16x128xf32>
    %727 = arith.addf %723, %726 : vector<16x128xf32>
    %728 = arith.minimumf %697, %727 : vector<16x128xf32>
    %c4_i32_87 = arith.constant 4 : i32
    %c2_i32_88 = arith.constant 2 : i32
    %729 = arith.muli %c2_i32_88, %c4_i32_87 : i32
    %730 = arith.addi %608, %729 : i32
    %731 = arith.index_cast %730 : i32 to index
    %732 = memref.load %arg3[%731] : memref<48xf32, #tpu.memory_space<smem>>
    %733 = vector.broadcast %732 : f32 to vector<16x128xf32>
    %734 = arith.mulf %733, %28 : vector<16x128xf32>
    %735 = arith.index_cast %730 : i32 to index
    %736 = memref.load %arg4[%735] : memref<48xf32, #tpu.memory_space<smem>>
    %737 = vector.broadcast %736 : f32 to vector<16x128xf32>
    %738 = arith.mulf %737, %33 : vector<16x128xf32>
    %739 = arith.addf %734, %738 : vector<16x128xf32>
    %740 = arith.index_cast %730 : i32 to index
    %741 = memref.load %arg5[%740] : memref<48xf32, #tpu.memory_space<smem>>
    %742 = vector.broadcast %741 : f32 to vector<16x128xf32>
    %743 = arith.addf %739, %742 : vector<16x128xf32>
    %744 = arith.minimumf %713, %743 : vector<16x128xf32>
    %c1_i32_89 = arith.constant 1 : i32
    %745 = arith.addi %730, %c1_i32_89 : i32
    %746 = arith.index_cast %745 : i32 to index
    %747 = memref.load %arg3[%746] : memref<48xf32, #tpu.memory_space<smem>>
    %748 = vector.broadcast %747 : f32 to vector<16x128xf32>
    %749 = arith.mulf %748, %28 : vector<16x128xf32>
    %750 = arith.index_cast %745 : i32 to index
    %751 = memref.load %arg4[%750] : memref<48xf32, #tpu.memory_space<smem>>
    %752 = vector.broadcast %751 : f32 to vector<16x128xf32>
    %753 = arith.mulf %752, %33 : vector<16x128xf32>
    %754 = arith.addf %749, %753 : vector<16x128xf32>
    %755 = arith.index_cast %745 : i32 to index
    %756 = memref.load %arg5[%755] : memref<48xf32, #tpu.memory_space<smem>>
    %757 = vector.broadcast %756 : f32 to vector<16x128xf32>
    %758 = arith.addf %754, %757 : vector<16x128xf32>
    %759 = arith.minimumf %728, %758 : vector<16x128xf32>
    %c5_i32_90 = arith.constant 5 : i32
    %c2_i32_91 = arith.constant 2 : i32
    %760 = arith.muli %c2_i32_91, %c5_i32_90 : i32
    %761 = arith.addi %608, %760 : i32
    %762 = arith.index_cast %761 : i32 to index
    %763 = memref.load %arg3[%762] : memref<48xf32, #tpu.memory_space<smem>>
    %764 = vector.broadcast %763 : f32 to vector<16x128xf32>
    %765 = arith.mulf %764, %28 : vector<16x128xf32>
    %766 = arith.index_cast %761 : i32 to index
    %767 = memref.load %arg4[%766] : memref<48xf32, #tpu.memory_space<smem>>
    %768 = vector.broadcast %767 : f32 to vector<16x128xf32>
    %769 = arith.mulf %768, %33 : vector<16x128xf32>
    %770 = arith.addf %765, %769 : vector<16x128xf32>
    %771 = arith.index_cast %761 : i32 to index
    %772 = memref.load %arg5[%771] : memref<48xf32, #tpu.memory_space<smem>>
    %773 = vector.broadcast %772 : f32 to vector<16x128xf32>
    %774 = arith.addf %770, %773 : vector<16x128xf32>
    %775 = arith.minimumf %744, %774 : vector<16x128xf32>
    %c1_i32_92 = arith.constant 1 : i32
    %776 = arith.addi %761, %c1_i32_92 : i32
    %777 = arith.index_cast %776 : i32 to index
    %778 = memref.load %arg3[%777] : memref<48xf32, #tpu.memory_space<smem>>
    %779 = vector.broadcast %778 : f32 to vector<16x128xf32>
    %780 = arith.mulf %779, %28 : vector<16x128xf32>
    %781 = arith.index_cast %776 : i32 to index
    %782 = memref.load %arg4[%781] : memref<48xf32, #tpu.memory_space<smem>>
    %783 = vector.broadcast %782 : f32 to vector<16x128xf32>
    %784 = arith.mulf %783, %33 : vector<16x128xf32>
    %785 = arith.addf %780, %784 : vector<16x128xf32>
    %786 = arith.index_cast %776 : i32 to index
    %787 = memref.load %arg5[%786] : memref<48xf32, #tpu.memory_space<smem>>
    %788 = vector.broadcast %787 : f32 to vector<16x128xf32>
    %789 = arith.addf %785, %788 : vector<16x128xf32>
    %790 = arith.minimumf %759, %789 : vector<16x128xf32>
    %c6_i32_93 = arith.constant 6 : i32
    %c2_i32_94 = arith.constant 2 : i32
    %791 = arith.muli %c2_i32_94, %c6_i32_93 : i32
    %792 = arith.addi %608, %791 : i32
    %793 = arith.index_cast %792 : i32 to index
    %794 = memref.load %arg3[%793] : memref<48xf32, #tpu.memory_space<smem>>
    %795 = vector.broadcast %794 : f32 to vector<16x128xf32>
    %796 = arith.mulf %795, %28 : vector<16x128xf32>
    %797 = arith.index_cast %792 : i32 to index
    %798 = memref.load %arg4[%797] : memref<48xf32, #tpu.memory_space<smem>>
    %799 = vector.broadcast %798 : f32 to vector<16x128xf32>
    %800 = arith.mulf %799, %33 : vector<16x128xf32>
    %801 = arith.addf %796, %800 : vector<16x128xf32>
    %802 = arith.index_cast %792 : i32 to index
    %803 = memref.load %arg5[%802] : memref<48xf32, #tpu.memory_space<smem>>
    %804 = vector.broadcast %803 : f32 to vector<16x128xf32>
    %805 = arith.addf %801, %804 : vector<16x128xf32>
    %806 = arith.minimumf %775, %805 : vector<16x128xf32>
    %c1_i32_95 = arith.constant 1 : i32
    %807 = arith.addi %792, %c1_i32_95 : i32
    %808 = arith.index_cast %807 : i32 to index
    %809 = memref.load %arg3[%808] : memref<48xf32, #tpu.memory_space<smem>>
    %810 = vector.broadcast %809 : f32 to vector<16x128xf32>
    %811 = arith.mulf %810, %28 : vector<16x128xf32>
    %812 = arith.index_cast %807 : i32 to index
    %813 = memref.load %arg4[%812] : memref<48xf32, #tpu.memory_space<smem>>
    %814 = vector.broadcast %813 : f32 to vector<16x128xf32>
    %815 = arith.mulf %814, %33 : vector<16x128xf32>
    %816 = arith.addf %811, %815 : vector<16x128xf32>
    %817 = arith.index_cast %807 : i32 to index
    %818 = memref.load %arg5[%817] : memref<48xf32, #tpu.memory_space<smem>>
    %819 = vector.broadcast %818 : f32 to vector<16x128xf32>
    %820 = arith.addf %816, %819 : vector<16x128xf32>
    %821 = arith.minimumf %790, %820 : vector<16x128xf32>
    %c7_i32_96 = arith.constant 7 : i32
    %c2_i32_97 = arith.constant 2 : i32
    %822 = arith.muli %c2_i32_97, %c7_i32_96 : i32
    %823 = arith.addi %608, %822 : i32
    %824 = arith.index_cast %823 : i32 to index
    %825 = memref.load %arg3[%824] : memref<48xf32, #tpu.memory_space<smem>>
    %826 = vector.broadcast %825 : f32 to vector<16x128xf32>
    %827 = arith.mulf %826, %28 : vector<16x128xf32>
    %828 = arith.index_cast %823 : i32 to index
    %829 = memref.load %arg4[%828] : memref<48xf32, #tpu.memory_space<smem>>
    %830 = vector.broadcast %829 : f32 to vector<16x128xf32>
    %831 = arith.mulf %830, %33 : vector<16x128xf32>
    %832 = arith.addf %827, %831 : vector<16x128xf32>
    %833 = arith.index_cast %823 : i32 to index
    %834 = memref.load %arg5[%833] : memref<48xf32, #tpu.memory_space<smem>>
    %835 = vector.broadcast %834 : f32 to vector<16x128xf32>
    %836 = arith.addf %832, %835 : vector<16x128xf32>
    %837 = arith.minimumf %806, %836 : vector<16x128xf32>
    %c1_i32_98 = arith.constant 1 : i32
    %838 = arith.addi %823, %c1_i32_98 : i32
    %839 = arith.index_cast %838 : i32 to index
    %840 = memref.load %arg3[%839] : memref<48xf32, #tpu.memory_space<smem>>
    %841 = vector.broadcast %840 : f32 to vector<16x128xf32>
    %842 = arith.mulf %841, %28 : vector<16x128xf32>
    %843 = arith.index_cast %838 : i32 to index
    %844 = memref.load %arg4[%843] : memref<48xf32, #tpu.memory_space<smem>>
    %845 = vector.broadcast %844 : f32 to vector<16x128xf32>
    %846 = arith.mulf %845, %33 : vector<16x128xf32>
    %847 = arith.addf %842, %846 : vector<16x128xf32>
    %848 = arith.index_cast %838 : i32 to index
    %849 = memref.load %arg5[%848] : memref<48xf32, #tpu.memory_space<smem>>
    %850 = vector.broadcast %849 : f32 to vector<16x128xf32>
    %851 = arith.addf %847, %850 : vector<16x128xf32>
    %852 = arith.minimumf %821, %851 : vector<16x128xf32>
    %c7_i32_99 = arith.constant 7 : i32
    %853 = arith.minimumf %837, %852 : vector<16x128xf32>
    %854 = arith.addf %36, %853 : vector<16x128xf32>
    %855 = vector.broadcast %595 : f32 to vector<16x128xf32>
    %856 = arith.cmpf oge, %28, %855 : vector<16x128xf32>
    %857 = vector.broadcast %599 : f32 to vector<16x128xf32>
    %858 = arith.cmpf oge, %33, %857 : vector<16x128xf32>
    %859 = arith.andi %856, %858 : vector<16x128xi1>
    %860 = vector.broadcast %603 : f32 to vector<16x128xf32>
    %861 = arith.cmpf ole, %28, %860 : vector<16x128xf32>
    %862 = arith.andi %859, %861 : vector<16x128xi1>
    %863 = vector.broadcast %607 : f32 to vector<16x128xf32>
    %864 = arith.cmpf ole, %33, %863 : vector<16x128xf32>
    %865 = arith.andi %862, %864 : vector<16x128xi1>
    %cst_100 = arith.constant 0.000000e+00 : f32
    %866 = vector.broadcast %cst_100 : f32 to vector<16x128xf32>
    %867 = arith.select %865, %866, %854 : vector<16x128xi1>, vector<16x128xf32>
    %868 = arith.addf %591, %867 : vector<16x128xf32>
    %c3_i32_101 = arith.constant 3 : i32
    %869 = tpu.iota {dimensions = array<i32: 1>} : vector<1x128xi32>
    %870 = vector.broadcast %14 : i32 to vector<1x128xi32>
    %871 = arith.addi %869, %870 : vector<1x128xi32>
    %c0_i32_102 = arith.constant 0 : i32
    %872 = vector.broadcast %c0_i32_102 : i32 to vector<1x128xi32>
    %873 = arith.addi %871, %872 : vector<1x128xi32>
    %c4_i32_103 = arith.constant 4 : i32
    %874 = vector.broadcast %c4_i32_103 : i32 to vector<1x128xi32>
    %875 = arith.cmpi slt, %873, %874 : vector<1x128xi32>
    %cst_104 = arith.constant 0.000000e+00 : f32
    %876 = vector.shape_cast %875 : vector<1x128xi1> to vector<1x128xi1>
    %877 = vector.broadcast %876 : vector<1x128xi1> to vector<16x128xi1>
    %878 = vector.broadcast %cst_104 : f32 to vector<16x128xf32>
    %879 = arith.select %877, %868, %878 : vector<16x128xi1>, vector<16x128xf32>
    %cst_105 = arith.constant dense<0.000000e+00> : vector<16xf32>
    %880 = vector.multi_reduction <add>, %879, %cst_105 [1] : vector<16x128xf32> to vector<16xf32>
    %881 = vector.shape_cast %880 : vector<16xf32> to vector<16x1xf32>
    %cst_106 = arith.constant dense<0.000000e+00> : vector<1xf32>
    %882 = vector.multi_reduction <add>, %881, %cst_106 [0] : vector<16x1xf32> to vector<1xf32>
    %883 = vector.shape_cast %882 : vector<1xf32> to vector<1x1xf32>
    %884 = arith.addf %15, %883 : vector<1x1xf32>
    %885 = vector.shape_cast %884 : vector<1x1xf32> to vector<1x1x1xf32>
    %886 = vector.broadcast %885 : vector<1x1x1xf32> to vector<1x1x128xf32>
    %c0_107 = arith.constant 0 : index
    %c0_108 = arith.constant 0 : index
    %c0_109 = arith.constant 0 : index
    %887 = vector.load %arg6[%c0_107, %c0_108, %c0_109] : memref<1x1x128xf32, #tpu.memory_space<vmem>>, vector<1x1x128xf32>
    tpu.vector_store %arg6[%c0_107, %c0_108, %c0_109], %886 {strides = array<i32>} : memref<1x1x128xf32, #tpu.memory_space<vmem>>, vector<1x1x128xf32>,
    return
  }
  func.func @transform_0(%arg0: i32) -> (i32, i32, i32) {
    %c0_i32 = arith.constant 0 : i32
    %c0_i32_0 = arith.constant 0 : i32
    %c0_i32_1 = arith.constant 0 : i32
    return %arg0, %c0_i32, %c0_i32_0 : i32, i32, i32
  }
  func.func @transform_1(%arg0: i32) -> i32 {
    %c0_i32 = arith.constant 0 : i32
    %c0_i32_0 = arith.constant 0 : i32
    return %c0_i32 : i32
  }
  func.func @transform_2(%arg0: i32) -> i32 {
    %c0_i32 = arith.constant 0 : i32
    %c0_i32_0 = arith.constant 0 : i32
    return %c0_i32 : i32
  }
  func.func @transform_3(%arg0: i32) -> i32 {
    %c0_i32 = arith.constant 0 : i32
    %c0_i32_0 = arith.constant 0 : i32
    return %c0_i32 : i32
  }
  func.func @transform_4(%arg0: i32) -> i32 {
    %c0_i32 = arith.constant 0 : i32
    %c0_i32_0 = arith.constant 0 : i32
    return %c0_i32 : i32
  }
  func.func @transform_5(%arg0: i32) -> (i32, i32, i32) {
    %c0_i32 = arith.constant 0 : i32
    %c0_i32_0 = arith.constant 0 : i32
    %c0_i32_1 = arith.constant 0 : i32
    return %arg0, %c0_i32, %c0_i32_0 : i32, i32, i32
  }
}

</mosaic_0001>

<bundles_post_ra>
// kernel: tpu_custom_call.1
= control target key start
LH: loop header
LB: loop body
LE: loop exit
PB: predicated region body
PF: predicated region fallthrough
CT: control target
= control target key end

     0   :  { %s2977_s0 = inlined_call_operand.hbm [shape: f32[1,8,128], index: 0, kind: input, shape index: {}]   ;;  %s2978_s1 = inlined_call_operand.vmem [shape: f32[12], index: 1, kind: input, shape index: {}]   ;;  %s2979_s2 = inlined_call_operand.vmem [shape: f32[48], index: 2, kind: input, shape index: {}]   ;;  %s2980_s3 = inlined_call_operand.vmem [shape: f32[48], index: 3, kind: input, shape index: {}]   ;;  %s2981_s4 = inlined_call_operand.vmem [shape: f32[48], index: 4, kind: input, shape index: {}]   ;;  %s2982_s5 = inlined_call_operand.hbm [shape: f32[1,1,128], index: 5, kind: output, shape index: {}]  }
   0x1   :  { %3101 = sst [smem:[#allocation60_spill]] %s2982_s5 }
   0x2   :  { %10 = vsyncpa [#allocation3], 0 }
   0x3   :  { %11 = vsyncpa [#allocation5], 0 }
   0x4   :  { %12 = vsyncpa [#allocation8], 0 }
   0x5   :  { %13 = vsyncpa [#allocation11], 0  ;;  %s41_s20 = sshll.u32 %s2979_s2, 4  ;;  %s42_s20 = int_to_ptr.vmem [resolvable:$true] %s41_s20 }
   0x6   :  { %14 = vsyncpa [#allocation4], 0  ;;  %s1180_s21 = scalar_lea.vmem %s42_s20, 16  ;;  %p1185_p1 = scmp.lt.s32.totalorder %s42_s20, %s42_s20 }
   0x7   :  { %p1181_p0 = scmp.ne.s32.totalorder %s42_s20, %s1180_s21  ;;  %p1186_p2 = scmp.lt.s32.totalorder %s1180_s21, %s1180_s21 }
   0x9   :  { %p1187_p3 = por %p1186_p2, %p1185_p1 }
   0xb   :  { %p1188_p4 = pnand %p1187_p3, %p1181_p0 }
   0xd   :  { %1191 = shalt.err (!%p1188_p4)
}
   0xe   :  { %s1278_s22 = smov [#allocation7]   ;;  %s1279_s23 = smov [#allocation2]  }
   0xf   :  { %44 = dma.vmem_to_smem %s42_s20, 16, %s1278_s22, [#allocation8]  }
  0x10   :  { %s21_s24 = sshll.u32 %s1279_s23, 4  ;;  %s31_s27 = sshll.u32 %s2978_s1, 4  ;;  %s22_s24 = int_to_ptr.vmem [resolvable:$true] %s21_s24  ;;  %s32_s27 = int_to_ptr.vmem [resolvable:$true] %s31_s27 }
  0x11   :  { %s1200_s2 = scalar_lea.vmem %s22_s24, 128  ;;  %p1205_p6 = scmp.lt.s32.totalorder %s22_s24, %s22_s24 }
  0x12   :  { %p1201_p5 = scmp.ne.s32.totalorder %s22_s24, %s1200_s2  ;;  %p1206_p7 = scmp.lt.s32.totalorder %s1200_s2, %s1200_s2 }
  0x14   :  { %p1207_p8 = por %p1206_p7, %p1205_p6 }
  0x16   :  { %p1208_p9 = pnand %p1207_p8, %p1201_p5 }
  0x18   :  { %1211 = shalt.err (!%p1208_p9)
}
  0x19   :  { %24 = dma.hbm_to_vmem [thread:$0]  %s2977_s0, 128, %s22_s24, [#allocation3]  }
  0x1a   :  { %s51_s7 = sshll.u32 %s2980_s3, 4  ;;  %s1212_s8 = scalar_lea.vmem %s32_s27, 16  ;;  %s52_s7 = int_to_ptr.vmem [resolvable:$true] %s51_s7 }
  0x1b   :  { %p1213_p10 = scmp.ne.s32.totalorder %s32_s27, %s1212_s8  ;;  %p1217_p11 = scmp.lt.s32.totalorder %s32_s27, %s32_s27 }
  0x1c   :  { %p1218_p12 = scmp.lt.s32.totalorder %s1212_s8, %s1212_s8 }
  0x1e   :  { %p1219_p13 = por %p1218_p12, %p1217_p11 }
  0x20   :  { %p1220_p0 = pnand %p1219_p13, %p1213_p10 }
  0x22   :  { %1223 = shalt.err (!%p1220_p0)
}
  0x23   :  { %s1280_s1 = smov [#allocation6]   ;;  %s1224_s9 = scalar_lea.vmem %s52_s7, 16 }
  0x24   :  { %34 = dma.vmem_to_smem %s32_s27, 16, %s1280_s1, [#allocation5]  }
  0x25   :  { %p1225_p1 = scmp.ne.s32.totalorder %s52_s7, %s1224_s9  ;;  %p1229_p2 = scmp.lt.s32.totalorder %s52_s7, %s52_s7 }
  0x26   :  { %p1230_p3 = scmp.lt.s32.totalorder %s1224_s9, %s1224_s9 }
  0x28   :  { %p1231_p4 = por %p1230_p3, %p1229_p2 }
  0x2a   :  { %p1232_p5 = pnand %p1231_p4, %p1225_p1 }
  0x2c   :  { %1235 = shalt.err (!%p1232_p5)
}
  0x2d   :  { %s1281_s0 = smov [#allocation9]   ;;  %s61_s11 = sshll.u32 %s2981_s4, 4  ;;  %s62_s11 = int_to_ptr.vmem [resolvable:$true] %s61_s11 }
  0x2e   :  { %54 = dma.vmem_to_smem %s52_s7, 16, %s1281_s0, [#allocation8]  }
  0x2f   :  { %s1236_s12 = scalar_lea.vmem %s62_s11, 16  ;;  %p1241_p7 = scmp.lt.s32.totalorder %s62_s11, %s62_s11 }
  0x30   :  { %p1237_p6 = scmp.ne.s32.totalorder %s62_s11, %s1236_s12  ;;  %p1242_p8 = scmp.lt.s32.totalorder %s1236_s12, %s1236_s12 }
  0x32   :  { %p1243_p9 = por %p1242_p8, %p1241_p7 }
  0x34   :  { %p1244_p10 = pnand %p1243_p9, %p1237_p6 }
  0x36   :  { %1247 = shalt.err (!%p1244_p10)
}
  0x37   :  { %s1282_s13 = smov [#allocation10]  }
  0x38   :  { %64 = dma.vmem_to_smem %s62_s11, 16, %s1282_s13, [#allocation11]  }
  0x39   :  { %1268 = dma.done.wait [#allocation3], 128  }
  0x3a   :  { %1269 = vsyncadd [#allocation3], 4294967168 }
  0x3b   :  { %1270 = dma.done.wait [#allocation5], 16  }
  0x3c   :  { %1271 = vsyncadd [#allocation5], 4294967280 }
  0x3d   :  { %1272 = dma.done.wait [#allocation8], 32  }
  0x3e   :  { %1273 = vsyncadd [#allocation8], 4294967264 }
  0x3f   :  { %1274 = dma.done.wait [#allocation11], 16  }
  0x40   :  { %1275 = vsyncadd [#allocation11], 4294967280 }
  0x41   :  { %80 = sfence }
  0x42   :  { %v81_v0 = vlaneseq  ;;  %v101_v1 = vld [vmem:[#allocation2] sm:$0xff]  ;;  %s1329_s4 = sld [smem:[#allocation6]] }
  0x43   :  { %s1331_s14 = sld [smem:[#allocation6 + $0x1]]  ;;  %v103_v3 = vrot.slane %v101_v1, 6 }
  0x44   :  { %v82_v2 = vshrl.u32 %v81_v0, 7  ;;  %s1334_s15 = sld [smem:[#allocation6 + $0x2]] }
  0x45   :  { %s1336_s16 = sld [smem:[#allocation6 + $0x3]]  ;;  %v105_v7 = vsub.f32 %v101_v1, %v103_v3 }
  0x46   :  { %v84_v4 = vcvt.s32.f32 %v82_v2  ;;  %s1338_s17 = sld [smem:[#allocation7]]  ;;  %v83_v5 = vadd.s32 8, %v82_v2  ;;  %v108_v8 = vsub.s32 2, %v82_v2  ;;  %v114_v11 = vsub.s32 0, %v82_v2 }
  0x47   :  { %s1340_s18 = sld [smem:[#allocation9]]  ;;  %v120_v15 = vsub.s32 3, %v82_v2  ;;  %v126_v20 = vsub.s32 1, %v82_v2 }
  0x48   :  { %3102 = sst [smem:[#allocation18_spill]] %s1329_s4  ;;  %v86_v6 = vadd.f32 0.5, %v84_v4  ;;  %v85_v9 = vcvt.s32.f32 %v83_v5  ;;  %v1350_v14 = vrot.slane %v105_v7, %v108_v8  ;;  %v1356_v19 = vrot.slane %v101_v1, %v114_v11 }
  0x49   :  { %3103 = sst [smem:[#allocation19_spill]] %s1331_s14  ;;  %v1363_v24 = vrot.slane %v105_v7, %v120_v15  ;;  %v1372_v27 = vrot.slane %v101_v1, %v126_v20 }
  0x4a   :  { %3104 = sst [smem:[#allocation20_spill]] %s1334_s15  ;;  %v88_v10 = vmul.f32 0.25, %v86_v6  ;;  %v87_v12 = vadd.f32 0.5, %v85_v9 }
  0x4b   :  { %3105 = sst [smem:[#allocation21_spill]] %s1336_s16 }
  0x4c   :  { %s1342_s19 = sld [smem:[#allocation10]]  ;;  %v90_v13 = vfloor.f32 %v88_v10  ;;  %v89_v16 = vmul.f32 0.25, %v87_v12  ;;  %v141_v28 = vstv %s1338_s17 }
  0x4d   :  { %s1344_s20 = sld [smem:[#allocation7 + $0x1]]  ;;  %v145_v32 = vstv %s1340_s18 }
  0x4e   :  { %s1346_s21 = sld [smem:[#allocation9 + $0x1]]  ;;  %v92_v17 = vmul.f32 0.33333334, %v90_v13  ;;  %v94_v18 = vmul.f32 4.0, %v90_v13  ;;  %v91_v21 = vfloor.f32 %v89_v16 }
  0x4f   :  { %s1348_s22 = sld [smem:[#allocation10 + $0x1]] }
  0x50   :  { %s1352_s23 = sld [smem:[#allocation7 + $0x2]]  ;;  %v96_v22 = vsub.f32 %v84_v4, %v94_v18  ;;  %v110_v23 = vmul.f32 %v1350_v14, %v92_v17  ;;  %v95_v30 = vmul.f32 4.0, %v91_v21  ;;  %v93_v41 = vmul.f32 0.33333334, %v91_v21 }
  0x51   :  { %s1354_s24 = sld [smem:[#allocation9 + $0x2]] }
  0x52   :  { %s1358_s25 = sld [smem:[#allocation10 + $0x2]]  ;;  %v98_v25 = vmul.f32 0.33333334, %v96_v22  ;;  %v1370_v26 = vadd.f32 %v1356_v19, %v110_v23  ;;  %v97_v42 = vsub.f32 %v85_v9, %v95_v30  ;;  %v151_v52 = vstv %s1342_s19 }
  0x53   :  { %s1360_s26 = sld [smem:[#allocation7 + $0x3]]  ;;  %v155_v33 = vstv %s1344_s20  ;;  %v111_v61 = vmul.f32 %v1350_v14, %v93_v41 }
  0x54   :  { %s1365_s27 = sld [smem:[#allocation9 + $0x3]]  ;;  %v122_v31 = vmul.f32 %v1363_v24, %v98_v25  ;;  %v159_v34 = vstv %s1346_s21  ;;  %v142_v38 = vmul.f32 %v141_v28, %v1370_v26  ;;  %v156_v44 = vmul.f32 %v155_v33, %v1370_v26 }
  0x55   :  { %s1367_s2 = sld [smem:[#allocation10 + $0x3]]  ;;  %v165_v54 = vstv %s1348_s22  ;;  %v99_v60 = vmul.f32 0.33333334, %v97_v42 }
  0x56   :  { %s1374_s28 = sld [smem:[#allocation7 + $0x4]]  ;;  %v169_v29 = vstv %s1352_s23  ;;  %v1391_v37 = vadd.f32 %v1372_v27, %v122_v31 }
  0x57   :  { %s1378_s29 = sld [smem:[#allocation9 + $0x4]]  ;;  %v173_v35 = vstv %s1354_s24  ;;  %v170_v39 = vmul.f32 %v169_v29, %v1370_v26  ;;  %v123_v15 = vmul.f32 %v1363_v24, %v99_v60  ;;  %v1492_v24 = vadd.f32 %v1356_v19, %v111_v61 }
  0x58   :  { %s1382_s30 = sld [smem:[#allocation10 + $0x4]]  ;;  %v146_v43 = vmul.f32 %v145_v32, %v1391_v37  ;;  %v174_v45 = vmul.f32 %v173_v35, %v1391_v37  ;;  %v160_v47 = vmul.f32 %v159_v34, %v1391_v37  ;;  %v179_v55 = vstv %s1358_s25 }
  0x59   :  { %v185_v36 = vstv %s1360_s26  ;;  %s1388_s6 = sld [smem:[#allocation7 + $0x5]]  ;;  %v3020_v60 = vstv %s1329_s4 }
  0x5a   :  { %v189_v40 = vstv %s1365_s27  ;;  %s1400_s7 = sld [smem:[#allocation9 + $0x5]]  ;;  %v186_v46 = vmul.f32 %v185_v36, %v1370_v26  ;;  %v148_v51 = vadd.f32 %v146_v43, %v142_v38  ;;  %v176_v53 = vadd.f32 %v174_v45, %v170_v39 }
  0x5b   :  { %3106 = sst [smem:[#allocation22_spill]] %s1367_s2  ;;  %v190_v48 = vmul.f32 %v189_v40, %v1391_v37  ;;  %v195_v58 = vstv %s1367_s2  ;;  %v162_v62 = vadd.f32 %v160_v47, %v156_v44  ;;  %v1504_v38 = vadd.f32 %v1372_v27, %v123_v15 }
  0x5c   :  { %s1402_s8 = sld [smem:[#allocation10 + $0x5]]  ;;  %v201_v49 = vstv %s1374_s28  ;;  %v152_v3 = vadd.f32 %v151_v52, %v148_v51  ;;  %v180_v4 = vadd.f32 %v179_v55, %v176_v53  ;;  %vm1992_vm0 = vcmp.ge.f32.partialorder %v1370_v26, %v3020_v60 }
  0x5d   :  { %s1416_s1 = sld [smem:[#allocation7 + $0x6]]  ;;  %v205_v50 = vstv %s1378_s29  ;;  %v202_v56 = vmul.f32 %v201_v49, %v1370_v26  ;;  %v192_v63 = vadd.f32 %v190_v48, %v186_v46  ;;  %v166_v12 = vadd.f32 %v165_v54, %v162_v62 }
  0x5e   :  { %3107 = sst [smem:[#allocation23_spill]] %s1382_s30  ;;  %v206_v57 = vmul.f32 %v205_v50, %v1391_v37  ;;  %v211_v1 = vstv %s1382_s30  ;;  %v182_v16 = vmin.f32 %v152_v3, %v180_v4  ;;  %v143_v48 = vmul.f32 %v141_v28, %v1492_v24 }
  0x5f   :  { %s1426_s9 = sld [smem:[#allocation9 + $0x6]]  ;;  %v217_v59 = vstv %s1388_s6  ;;  %v196_v13 = vadd.f32 %v195_v58, %v192_v63  ;;  %v147_v51 = vmul.f32 %v145_v32, %v1504_v38  ;;  %v157_v28 = vmul.f32 %v155_v33, %v1492_v24 }
  0x60   :  { %s1429_s0 = sld [smem:[#allocation10 + $0x6]]  ;;  %v221_v2 = vstv %s1400_s7  ;;  %v208_v5 = vadd.f32 %v206_v57, %v202_v56  ;;  %v218_v7 = vmul.f32 %v217_v59, %v1370_v26  ;;  %v161_v32 = vmul.f32 %v159_v34, %v1504_v38 }
  0x61   :  { %s1439_s3 = sld [smem:[#allocation7 + $0x7]]  ;;  %v222_v8 = vmul.f32 %v221_v2, %v1391_v37  ;;  %v198_v19 = vmin.f32 %v166_v12, %v196_v13  ;;  %v149_v34 = vadd.f32 %v147_v51, %v143_v48  ;;  %v171_v12 = vmul.f32 %v169_v29, %v1492_v24 }
  0x62   :  { %s1443_s10 = sld [smem:[#allocation9 + $0x7]]  ;;  %v212_v17 = vadd.f32 %v211_v1, %v208_v5  ;;  %v227_v18 = vstv %s1402_s8  ;;  %v175_v13 = vmul.f32 %v173_v35, %v1504_v38  ;;  %v1587_v29 = vmul.f32 %v1391_v37, %v1391_v37 }
  0x63   :  { %s1448_s11 = sld [smem:[#allocation10 + $0x7]]  ;;  %v233_v6 = vstv %s1416_s1  ;;  %v224_v21 = vadd.f32 %v222_v8, %v218_v7 }
  0x64   :  { %s1455_s12 = sld [smem:[#allocation7 + $0x8]]  ;;  %v234_v9 = vmul.f32 %v233_v6, %v1370_v26  ;;  %v214_v43 = vmin.f32 %v182_v16, %v212_v17 }
  0x65   :  { %v237_v10 = vstv %s1426_s9  ;;  %s1467_s13 = sld [smem:[#allocation9 + $0x8]]  ;;  %v228_v27 = vadd.f32 %v227_v18, %v224_v21  ;;  %v163_v21 = vadd.f32 %v161_v32, %v157_v28 }
  0x66   :  { %v238_v11 = vmul.f32 %v237_v10, %v1391_v37  ;;  %s1472_s5 = sld [smem:[#allocation10 + $0x8]]  ;;  %v243_v23 = vstv %s1429_s0 }
  0x67   :  { %3108 = sst [smem:[#allocation24_spill]] %s1439_s3  ;;  %v249_v14 = vstv %s1439_s3  ;;  %v230_v63 = vmin.f32 %v198_v19, %v228_v27 }
  0x68   :  { %3109 = sst [smem:[#allocation25_spill]] %s1443_s10  ;;  %v253_v20 = vstv %s1443_s10  ;;  %v240_v22 = vadd.f32 %v238_v11, %v234_v9  ;;  %v250_v25 = vmul.f32 %v249_v14, %v1370_v26 }
  0x69   :  { %s1479_s16 = sld [smem:[#allocation7 + $0x9]]  ;;  %v254_v30 = vmul.f32 %v253_v20, %v1391_v37  ;;  %v259_v53 = vstv %s1448_s11 }
  0x6a   :  { %3110 = sst [smem:[#allocation26_spill]] %s1455_s12  ;;  %v265_v31 = vstv %s1455_s12  ;;  %v244_v44 = vadd.f32 %v243_v23, %v240_v22  ;;  %v1583_v22 = vmul.f32 %v1370_v26, %v1370_v26 }
  0x6b   :  { %3111 = sst [smem:[#allocation27_spill]] %s1467_s13  ;;  %v269_v39 = vstv %s1467_s13  ;;  %v266_v41 = vmul.f32 %v265_v31, %v1370_v26  ;;  %v256_v46 = vadd.f32 %v254_v30, %v250_v25 }
  0x6c   :  { %3112 = sst [smem:[#allocation28_spill]] %s1472_s5  ;;  %v270_v42 = vmul.f32 %v269_v39, %v1391_v37  ;;  %v246_v3 = vmin.f32 %v214_v43, %v244_v44  ;;  %v275_v4 = vstv %s1472_s5 }
  0x6d   :  { %s1486_s15 = sld [smem:[#allocation9 + $0x9]]  ;;  %v260_v7 = vadd.f32 %v259_v53, %v256_v46  ;;  %v177_v46 = vadd.f32 %v175_v13, %v171_v12  ;;  %v207_v13 = vmul.f32 %v205_v50, %v1504_v38 }
  0x6e   :  { %s1489_s14 = sld [smem:[#allocation10 + $0x9]]  ;;  %v272_v61 = vadd.f32 %v270_v42, %v266_v41 }
  0x6f   :  { %s1501_s30 = sld [smem:[#allocation7 + $0xa]]  ;;  %v281_v45 = vstv %s1479_s16  ;;  %v262_v30 = vmin.f32 %v230_v63, %v260_v7  ;;  %v187_v63 = vmul.f32 %v185_v36, %v1492_v24  ;;  %v191_v7 = vmul.f32 %v189_v40, %v1504_v38 }
  0x70   :  { %s1507_s2 = sld [smem:[#allocation9 + $0xa]]  ;;  %v282_v56 = vmul.f32 %v281_v45, %v1370_v26  ;;  %v276_v15 = vadd.f32 %v275_v4, %v272_v61  ;;  %v203_v40 = vmul.f32 %v201_v49, %v1492_v24 }
  0x71   :  { %s1515_s10 = sld [smem:[#allocation10 + $0xa]]  ;;  %v193_v50 = vadd.f32 %v191_v7, %v187_v63  ;;  %v235_v63 = vmul.f32 %v233_v6, %v1492_v24  ;;  %v239_v6 = vmul.f32 %v237_v10, %v1504_v38 }
  0x72   :  { %s1522_s3 = sld [smem:[#allocation7 + $0xb]]  ;;  %v278_v48 = vmin.f32 %v246_v3, %v276_v15 }
  0x73   :  { %v285_v47 = vstv %s1486_s15  ;;  %s1525_s12 = sld [smem:[#allocation9 + $0xb]] }
  0x74   :  { %v286_v57 = vmul.f32 %v285_v47, %v1391_v37  ;;  %s1540_s13 = sld [smem:[#allocation10 + $0xb]]  ;;  %v291_v16 = vstv %s1489_s14 }
  0x75   :  { %v297_v62 = vstv %s1501_s30  ;;  %s1544_s17 = sld [smem:[#allocation7 + $0xc]] }
  0x76   :  { %v301_v5 = vstv %s1507_s2  ;;  %s1554_s18 = sld [smem:[#allocation9 + $0xc]]  ;;  %v298_v8 = vmul.f32 %v297_v62, %v1370_v26  ;;  %v288_v9 = vadd.f32 %v286_v57, %v282_v56  ;;  %v1616_v56 = vadd.f32 %v151_v52, %v149_v34 }
  0x77   :  { %v302_v33 = vmul.f32 %v301_v5, %v1391_v37  ;;  %s1564_s20 = sld [smem:[#allocation10 + $0xc]]  ;;  %v307_v41 = vstv %s1515_s10  ;;  %v1620_v57 = vadd.f32 %v165_v54, %v163_v21  ;;  %v1647_v34 = vadd.f32 %v179_v55, %v177_v46 }
  0x78   :  { %v313_v11 = vstv %s1522_s3  ;;  %s1567_s21 = sld [smem:[#allocation7 + $0xd]]  ;;  %v292_v43 = vadd.f32 %v291_v16, %v288_v9  ;;  %v223_v46 = vmul.f32 %v221_v2, %v1504_v38 }
  0x79   :  { %3113 = sst [smem:[#allocation29_spill]] %s1525_s12  ;;  %v317_v17 = vstv %s1525_s12  ;;  %v314_v35 = vmul.f32 %v313_v11, %v1370_v26  ;;  %v304_v19 = vadd.f32 %v302_v33, %v298_v8  ;;  %v183_v10 = vmin.f32 %v1616_v56, %v1647_v34 }
  0x7a   :  { %s1579_s4 = sld [smem:[#allocation9 + $0xd]]  ;;  %v318_v25 = vmul.f32 %v317_v17, %v1391_v37  ;;  %v323_v28 = vstv %s1540_s13  ;;  %v294_v8 = vmin.f32 %v262_v30, %v292_v43 }
  0x7b   :  { %3114 = sst [smem:[#allocation30_spill]] %s1544_s17  ;;  %v329_v42 = vstv %s1544_s17  ;;  %v308_v52 = vadd.f32 %v307_v41, %v304_v19 }
  0x7c   :  { %s1595_s23 = sld [smem:[#allocation10 + $0xd]]  ;;  %v330_v27 = vmul.f32 %v329_v42, %v1370_v26  ;;  %v333_v44 = vstv %s1554_s18  ;;  %v320_v61 = vadd.f32 %v318_v25, %v314_v35 }
  0x7d   :  { %3115 = sst [smem:[#allocation31_spill]] %s1564_s20  ;;  %v334_v51 = vmul.f32 %v333_v44, %v1391_v37  ;;  %v339_v9 = vstv %s1564_s20  ;;  %v310_v25 = vmin.f32 %v278_v48, %v308_v52 }
  0x7e   :  { %s1599_s24 = sld [smem:[#allocation7 + $0xe]]  ;;  %v345_v32 = vstv %s1567_s21  ;;  %v324_v15 = vadd.f32 %v323_v28, %v320_v61  ;;  %v209_v61 = vadd.f32 %v207_v13, %v203_v40  ;;  %v133_v40 = vmul.f32 %v1504_v38, %v1504_v38 }
  0x7f   :  { %s1607_s5 = sld [smem:[#allocation9 + $0xe]]  ;;  %v346_v3 = vmul.f32 %v345_v32, %v1370_v26  ;;  %v336_v33 = vadd.f32 %v334_v51, %v330_v27  ;;  %v219_v27 = vmul.f32 %v217_v59, %v1492_v24  ;;  %v197_v13 = vadd.f32 %v195_v58, %v193_v50 }
  0x80   :  { %s1612_s12 = sld [smem:[#allocation10 + $0xe]]  ;;  %v349_v54 = vstv %s1579_s4  ;;  %v326_v52 = vmin.f32 %v294_v8, %v324_v15  ;;  %v251_v58 = vmul.f32 %v249_v14, %v1492_v24 }
  0x81   :  { %s1624_s17 = sld [smem:[#allocation7 + $0xf]]  ;;  %v350_v36 = vmul.f32 %v349_v54, %v1391_v37  ;;  %v340_v19 = vadd.f32 %v339_v9, %v336_v33  ;;  %v225_v15 = vadd.f32 %v223_v46, %v219_v27  ;;  %v199_v27 = vmin.f32 %v1620_v57, %v197_v13 }
  0x82   :  { %3116 = sst [smem:[#allocation32_spill]] %s1595_s23  ;;  %v355_v30 = vstv %s1595_s23  ;;  %v1747_v46 = vadd.f32 %v1587_v29, %v1583_v22  ;;  %v1762_v22 = vand.u32 127, %v81_v0 }
  0x83   :  { %s1635_s19 = sld [smem:[#allocation9 + $0xf]]  ;;  %v352_v55 = vadd.f32 %v350_v36, %v346_v3  ;;  %v131_v36 = vmul.f32 %v1492_v24, %v1492_v24  ;;  %v229_v14 = vadd.f32 %v227_v18, %v225_v15  ;;  %v287_v15 = vmul.f32 %v285_v47, %v1504_v38 }
  0x84   :  { %s1643_s22 = sld [smem:[#allocation10 + $0xf]]  ;;  %v361_v12 = vstv %s1599_s24 }
  0x85   :  { %s1651_s26 = sld [smem:[#allocation6 + $0x4]]  ;;  %v362_v21 = vmul.f32 %v361_v12, %v1370_v26  ;;  %v365_v35 = vstv %s1607_s5  ;;  %v356_v3 = vadd.f32 %v355_v30, %v352_v55  ;;  %v342_v55 = vmin.f32 %v310_v25, %v340_v19 }
  0x86   :  { %s1665_s25 = sld [smem:[#allocation6 + $0x5]]  ;;  %v366_v49 = vmul.f32 %v365_v35, %v1391_v37  ;;  %v371_v2 = vstv %s1612_s12  ;;  %v1776_v0 = vmin.f32 %v199_v27, %v229_v14  ;;  %v299_v14 = vmul.f32 %v297_v62, %v1492_v24 }
  0x87   :  { %3117 = sst [smem:[#allocation33_spill]] %s1624_s17  ;;  %v377_v43 = vstv %s1624_s17  ;;  %v315_v62 = vmul.f32 %v313_v11, %v1492_v24 }
  0x88   :  { %s1671_s27 = sld [smem:[#allocation6 + $0x6]]  ;;  %v378_v48 = vmul.f32 %v377_v43, %v1370_v26  ;;  %v368_v7 = vadd.f32 %v366_v49, %v362_v21  ;;  %v213_v21 = vadd.f32 %v211_v1, %v209_v61  ;;  %v241_v49 = vadd.f32 %v239_v6, %v235_v63 }
  0x89   :  { %3118 = sst [smem:[#allocation34_spill]] %s1635_s19  ;;  %v3005_v51 = vstv %s1635_s19  ;;  %v255_v1 = vmul.f32 %v253_v20, %v1504_v38  ;;  %v1751_v20 = vadd.f32 %v133_v40, %v131_v36  ;;  %v271_v36 = vmul.f32 %v269_v39, %v1504_v38 }
  0x8a   :  { %3119 = sst [smem:[#allocation35_spill]] %s1643_s22  ;;  %v382_v59 = vmul.f32 %v3005_v51, %v1391_v37  ;;  %v387_v33 = vstv %s1643_s22  ;;  %v1753_v61 = vmin.f32 %v183_v10, %v213_v21  ;;  %v1757_v63 = vadd.f32 %v243_v23, %v241_v49 }
  0x8b   :  { %3120 = sst [smem:[#allocation36_spill]] %s1651_s26  ;;  %v257_v29 = vadd.f32 %v255_v1, %v251_v58  ;;  %v283_v6 = vmul.f32 %v281_v45, %v1492_v24 }
  0x8c   :  { %3121 = sst [smem:[#allocation37_spill]] %s1665_s25  ;;  %v384_v8 = vadd.f32 %v382_v59, %v378_v48  ;;  %v358_v48 = vmin.f32 %v326_v52, %v356_v3  ;;  %v372_v59 = vadd.f32 %v371_v2, %v368_v7  ;;  %v247_v13 = vmin.f32 %v1753_v61, %v1757_v63 }
  0x8d   :  { %s1676_s28 = sld [smem:[#allocation6 + $0x7]]  ;;  %v289_v58 = vadd.f32 %v287_v15, %v283_v6  ;;  %v303_v61 = vmul.f32 %v301_v5, %v1504_v38  ;;  %v319_v5 = vmul.f32 %v317_v17, %v1504_v38 }
  0x8e   :  { %3122 = sst [smem:[#allocation38_spill]] %s1671_s27  ;;  %v388_v51 = vadd.f32 %v387_v33, %v384_v8  ;;  %v374_v57 = vmin.f32 %v342_v55, %v372_v59  ;;  %v261_v55 = vadd.f32 %v259_v53, %v257_v29 }
  0x8f   :  { %s1688_s29 = sld [smem:[#allocation7 + $0x10]]  ;;  %v293_v6 = vadd.f32 %v291_v16, %v289_v58 }
  0x90   :  { %s1698_s7 = sld [smem:[#allocation9 + $0x10]]  ;;  %v390_v18 = vmin.f32 %v358_v48, %v388_v51  ;;  %v267_v51 = vmul.f32 %v265_v31, %v1492_v24  ;;  %v263_v29 = vmin.f32 %v1776_v0, %v261_v55 }
  0x91   :  { %s3128_s25 = sld [smem:[#allocation19_spill]] }
  0x92   :  { %s3129_s26 = sld [smem:[#allocation20_spill]]  ;;  %v1807_v10 = vmin.f32 %v374_v57, %v390_v18  ;;  %v273_v53 = vadd.f32 %v271_v36, %v267_v51 }
  0x93   :  { %3123 = sst [smem:[#allocation39_spill]] %s1676_s28 }
  0x94   :  { %s1702_s28 = sld [smem:[#allocation10 + $0x10]]  ;;  %v277_v0 = vadd.f32 %v275_v4, %v273_v53  ;;  %v321_v4 = vadd.f32 %v319_v5, %v315_v62  ;;  %v331_v62 = vmul.f32 %v329_v42, %v1492_v24  ;;  %v347_v42 = vmul.f32 %v345_v32, %v1492_v24 }
  0x95   :  { %s1709_s19 = sld [smem:[#allocation7 + $0x11]]  ;;  %v423_v56 = vstv %s1688_s29 }
  0x96   :  { %3126 = sst [smem:[#allocation22_spill]] %s1698_s7  ;;  %v427_v34 = vstv %s1698_s7  ;;  %v424_v52 = vmul.f32 %v423_v56, %v1370_v26 }
  0x97   :  { %s3130_s23 = sld [smem:[#allocation21_spill]]  ;;  %v3019_v25 = vstv %s3128_s25  ;;  %v428_v23 = vmul.f32 %v427_v34, %v1391_v37 }
  0x98   :  { %s1715_s20 = sld [smem:[#allocation9 + $0x11]]  ;;  %v3026_v50 = vstv %s3129_s26  ;;  %vm1999_vm1 = vcmp.ge.f32.partialorder %v1391_v37, %v3019_v25 }
  0x99   :  { %s1725_s9 = sld [smem:[#allocation10 + $0x11]]  ;;  %v430_v21 = vadd.f32 %v428_v23, %v424_v52  ;;  %vm2029_vm2 = vcmp.le.f32.partialorder %v1370_v26, %v3026_v50  ;;  %vm402_vm4 = vmand %vm1992_vm0, %vm1999_vm1 }
  0x9a   :  { %s1733_s27 = sld [smem:[#allocation7 + $0x12]]  ;;  %v433_v8 = vstv %s1702_s28  ;;  %vm2141_vm5 = vmand %vm402_vm4, %vm2029_vm2 }
  0x9b   :  { %s1740_s6 = sld [smem:[#allocation9 + $0x12]]  ;;  %v437_v3 = vstv %s1709_s19  ;;  %v434_v15 = vadd.f32 %v433_v8, %v430_v21 }
  0x9c   :  { %s1749_s1 = sld [smem:[#allocation10 + $0x12]]  ;;  %v438_v31 = vmul.f32 %v437_v3, %v1370_v26 }
  0x9d   :  { %v3033_v19 = vstv %s3130_s23  ;;  %s1759_s8 = sld [smem:[#allocation7 + $0x13]] }
  0x9e   :  { %v441_v7 = vstv %s1715_s20  ;;  %s1772_s0 = sld [smem:[#allocation9 + $0x13]]  ;;  %vm2059_vm3 = vcmp.le.f32.partialorder %v1391_v37, %v3033_v19 }
  0x9f   :  { %s1774_s22 = sld [smem:[#allocation10 + $0x13]]  ;;  %v442_v39 = vmul.f32 %v441_v7, %v1391_v37  ;;  %v447_v48 = vstv %s1725_s9  ;;  %vm412_vm6 = vmand %vm2141_vm5, %vm2059_vm3  ;;  %vm986_vm3 = vcmp.lt.s32.totalorder %v1762_v22, 4 }
  0xa0   :  { %v451_v40 = vstv %s1733_s27  ;;  %s1789_s7 = sld [smem:[#allocation7 + $0x14]] }
  0xa1   :  { %3132 = sst [smem:[#allocation23_spill]] %s1740_s6  ;;  %v455_v45 = vstv %s1740_s6  ;;  %v452_v47 = vmul.f32 %v451_v40, %v1370_v26  ;;  %v444_v63 = vadd.f32 %v442_v39, %v438_v31  ;;  %v305_v31 = vadd.f32 %v303_v61, %v299_v14 }
  0xa2   :  { %s1803_s16 = sld [smem:[#allocation9 + $0x14]]  ;;  %v456_v49 = vmul.f32 %v455_v45, %v1391_v37  ;;  %v461_v57 = vstv %s1749_s1  ;;  %v1886_v14 = vmin.f32 %v247_v13, %v277_v0  ;;  %v1888_v61 = vmin.f32 %v263_v29, %v293_v6 }
  0xa3   :  { %3135 = sst [smem:[#allocation24_spill]] %s1759_s8  ;;  %v467_v59 = vstv %s1759_s8  ;;  %v448_v39 = vadd.f32 %v447_v48, %v444_v63  ;;  %v1907_v29 = vadd.f32 %v323_v28, %v321_v4 }
  0xa4   :  { %s1815_s15 = sld [smem:[#allocation10 + $0x14]]  ;;  %v468_v1 = vmul.f32 %v467_v59, %v1370_v26  ;;  %v471_v27 = vstv %s1772_s0  ;;  %v458_v52 = vadd.f32 %v456_v49, %v452_v47 }
  0xa5   :  { %s1819_s23 = sld [smem:[#allocation7 + $0x15]]  ;;  %v472_v18 = vmul.f32 %v471_v27, %v1391_v37  ;;  %v477_v55 = vstv %s1774_s22 }
  0xa6   :  { %s1825_s17 = sld [smem:[#allocation9 + $0x15]]  ;;  %v483_v23 = vstv %s1789_s7  ;;  %v462_v16 = vadd.f32 %v461_v57, %v458_v52  ;;  %v1897_v52 = vadd.f32 %v307_v41, %v305_v31 }
  0xa7   :  { %s1837_s8 = sld [smem:[#allocation10 + $0x15]]  ;;  %v484_v51 = vmul.f32 %v483_v23, %v1370_v26  ;;  %v474_v11 = vadd.f32 %v472_v18, %v468_v1 }
  0xa8   :  { %3136 = sst [smem:[#allocation25_spill]] %s1803_s16  ;;  %v487_v36 = vstv %s1803_s16  ;;  %v464_v0 = vmin.f32 %v434_v15, %v462_v16  ;;  %v311_v4 = vmin.f32 %v1886_v14, %v1897_v52  ;;  %v363_v14 = vmul.f32 %v361_v12, %v1492_v24 }
  0xa9   :  { %s1841_s30 = sld [smem:[#allocation7 + $0x16]]  ;;  %v488_v17 = vmul.f32 %v487_v36, %v1391_v37  ;;  %v478_v63 = vadd.f32 %v477_v55, %v474_v11 }
  0xaa   :  { %s1853_s2 = sld [smem:[#allocation9 + $0x16]]  ;;  %v493_v58 = vstv %s1815_s15 }
  0xab   :  { %3137 = sst [smem:[#allocation26_spill]] %s1819_s23  ;;  %v499_v47 = vstv %s1819_s23  ;;  %v490_v21 = vadd.f32 %v488_v17, %v484_v51  ;;  %v335_v51 = vmul.f32 %v333_v44, %v1504_v38  ;;  %v351_v44 = vmul.f32 %v349_v54, %v1504_v38 }
  0xac   :  { %3139 = sst [smem:[#allocation27_spill]] %s1825_s17  ;;  %v500_v49 = vmul.f32 %v499_v47, %v1370_v26  ;;  %v503_v53 = vstv %s1825_s17  ;;  %v480_v15 = vmin.f32 %v448_v39, %v478_v63  ;;  %v327_v54 = vmin.f32 %v1888_v61, %v1907_v29 }
  0xad   :  { %3141 = sst [smem:[#allocation29_spill]] %s1837_s8  ;;  %v504_v1 = vmul.f32 %v503_v53, %v1391_v37  ;;  %v494_v41 = vadd.f32 %v493_v58, %v490_v21  ;;  %v509_v6 = vstv %s1837_s8  ;;  %v337_v39 = vadd.f32 %v335_v51, %v331_v62 }
  0xae   :  { %s1864_s3 = sld [smem:[#allocation10 + $0x16]]  ;;  %v367_v63 = vmul.f32 %v365_v35, %v1504_v38 }
  0xaf   :  { %3142 = sst [smem:[#allocation28_spill]] %s1841_s30  ;;  %v515_v18 = vstv %s1841_s30  ;;  %v506_v13 = vadd.f32 %v504_v1, %v500_v49  ;;  %v353_v1 = vadd.f32 %v351_v44, %v347_v42  ;;  %v1958_v52 = vmin.f32 %v464_v0, %v494_v41 }
  0xb0   :  { %3143 = sst [smem:[#allocation40_spill]] %s1853_s2  ;;  %v519_v5 = vstv %s1853_s2  ;;  %v516_v11 = vmul.f32 %v515_v18, %v1370_v26  ;;  %v341_v42 = vadd.f32 %v339_v9, %v337_v39 }
  0xb1   :  { %s1870_s14 = sld [smem:[#allocation7 + $0x17]]  ;;  %v520_v28 = vmul.f32 %v519_v5, %v1391_v37  ;;  %v510_v16 = vadd.f32 %v509_v6, %v506_v13 }
  0xb2   :  { %s1878_s11 = sld [smem:[#allocation9 + $0x17]] }
  0xb3   :  { %s1884_s16 = sld [smem:[#allocation10 + $0x17]]  ;;  %v522_v13 = vadd.f32 %v520_v28, %v516_v11  ;;  %v512_v0 = vmin.f32 %v480_v15, %v510_v16  ;;  %v379_v11 = vmul.f32 %v377_v43, %v1492_v24  ;;  %v357_v15 = vadd.f32 %v355_v30, %v353_v1 }
  0xb4   :  { %s1893_s23 = sld [smem:[#allocation7 + $0x18]]  ;;  %v525_v29 = vstv %s1864_s3 }
  0xb5   :  { %s1903_s17 = sld [smem:[#allocation9 + $0x18]]  ;;  %v526_v16 = vadd.f32 %v525_v29, %v522_v13 }
  0xb6   :  { %s1915_s10 = sld [smem:[#allocation10 + $0x18]] }
  0xb7   :  { %3144 = sst [smem:[#allocation41_spill]] %s1870_s14  ;;  %v531_v17 = vstv %s1870_s14 }
  0xb8   :  { %3146 = sst [smem:[#allocation30_spill]] %s1878_s11  ;;  %v532_v31 = vmul.f32 %v531_v17, %v1370_v26  ;;  %v535_v32 = vstv %s1878_s11 }
  0xb9   :  { %s1927_s13 = sld [smem:[#allocation7 + $0x19]]  ;;  %v536_v21 = vmul.f32 %v535_v32, %v1391_v37  ;;  %v3030_v51 = vstv %s1884_s16 }
  0xba   :  { %s1936_s18 = sld [smem:[#allocation9 + $0x19]]  ;;  %v547_v49 = vstv %s1893_s23 }
  0xbb   :  { %3147 = sst [smem:[#allocation42_spill]] %s1903_s17  ;;  %v538_v61 = vadd.f32 %v536_v21, %v532_v31  ;;  %v551_v62 = vstv %s1903_s17  ;;  %v548_v12 = vmul.f32 %v547_v49, %v1370_v26  ;;  %v369_v31 = vadd.f32 %v367_v63, %v363_v14 }
  0xbc   :  { %s1945_s4 = sld [smem:[#allocation10 + $0x19]]  ;;  %v552_v35 = vmul.f32 %v551_v62, %v1391_v37  ;;  %v557_v63 = vstv %s1915_s10 }
  0xbd   :  { %s1950_s21 = sld [smem:[#allocation7 + $0x1a]]  ;;  %v542_v30 = vadd.f32 %v3030_v51, %v538_v61 }
  0xbe   :  { %s1961_s2 = sld [smem:[#allocation9 + $0x1a]]  ;;  %v554_v14 = vadd.f32 %v552_v35, %v548_v12 }
  0xbf   :  { %s1971_s5 = sld [smem:[#allocation10 + $0x1a]]  ;;  %v3028_v41 = vstv %s1927_s13 }
  0xc0   :  { %3148 = sst [smem:[#allocation43_spill]] %s1936_s18  ;;  %v564_v28 = vmul.f32 %v3028_v41, %v1370_v26  ;;  %v3021_v44 = vstv %s1936_s18 }
  0xc1   :  { %s3156_s24 = sld [smem:[#allocation34_spill]]  ;;  %v568_v21 = vmul.f32 %v3021_v44, %v1391_v37 }
  0xc2   :  { %s1974_s30 = sld [smem:[#allocation7 + $0x1b]]  ;;  %v573_v25 = vstv %s1945_s4 }
  0xc3   :  { %3149 = sst [smem:[#allocation44_spill]] %s1950_s21  ;;  %v3024_v60 = vstv %s1950_s21  ;;  %v570_v13 = vadd.f32 %v568_v21, %v564_v28  ;;  %v343_v28 = vmin.f32 %v311_v4, %v341_v42  ;;  %v359_v21 = vmin.f32 %v327_v54, %v357_v15 }
  0xc4   :  { %3153 = sst [smem:[#allocation31_spill]] %s1961_s2  ;;  %v580_v61 = vmul.f32 %v3024_v60, %v1370_v26  ;;  %v3029_v44 = vstv %s1961_s2  ;;  %v373_v60 = vadd.f32 %v371_v2, %v369_v31 }
  0xc5   :  { %3155 = sst [smem:[#allocation33_spill]] %s1971_s5  ;;  %v584_v35 = vmul.f32 %v3029_v44, %v1391_v37  ;;  %v558_v44 = vadd.f32 %v557_v63, %v554_v14  ;;  %v574_v51 = vadd.f32 %v573_v25, %v570_v13  ;;  %v589_v15 = vstv %s1971_s5 }
  0xc6   :  { %s1985_s17 = sld [smem:[#allocation9 + $0x1b]]  ;;  %v2076_v14 = vadd.f32 %v1807_v10, %v1747_v46 }
  0xc7   :  { %s2010_s14 = sld [smem:[#allocation10 + $0x1b]]  ;;  %v3162_v39 = vstv %s3156_s24 }
  0xc8   :  { %v383_v1 = vmul.f32 %v3162_v39, %v1504_v38  ;;  %s2018_s11 = sld [smem:[#allocation7 + $0x1c]]  ;;  %v595_v50 = vstv %s1974_s30 }
  0xc9   :  { %s2024_s25 = sld [smem:[#allocation9 + $0x1c]]  ;;  %v596_v4 = vmul.f32 %v595_v50, %v1370_v26 }
  0xca   :  { %v385_v39 = vadd.f32 %v383_v1, %v379_v11  ;;  %s2036_s8 = sld [smem:[#allocation10 + $0x1c]]  ;;  %v528_v11 = vmin.f32 %v1958_v52, %v526_v16  ;;  %v544_v1 = vmin.f32 %v512_v0, %v542_v30  ;;  %v375_v16 = vmin.f32 %v343_v28, %v373_v60 }
  0xcb   :  { %s3169_s21 = sld [smem:[#allocation36_spill]] }
  0xcc   :  { %3157 = sst [smem:[#allocation32_spill]] %s1985_s17  ;;  %v389_v41 = vadd.f32 %v387_v33, %v385_v39  ;;  %v599_v2 = vstv %s1985_s17  ;;  %v586_v33 = vadd.f32 %v584_v35, %v580_v61  ;;  %v560_v35 = vmin.f32 %v528_v11, %v558_v44 }
  0xcd   :  { %s3170_s18 = sld [smem:[#allocation37_spill]]  ;;  %v600_v52 = vmul.f32 %v599_v2, %v1391_v37  ;;  %v2085_v19 = vmin.f32 %v544_v1, %v574_v51  ;;  %v605_v28 = vstv %s2010_s14  ;;  %v425_v51 = vmul.f32 %v423_v56, %v1492_v24 }
  0xce   :  { %3163 = sst [smem:[#allocation34_spill]] %s2018_s11  ;;  %v611_v31 = vstv %s2018_s11  ;;  %v391_v30 = vmin.f32 %v359_v21, %v389_v41  ;;  %v590_v41 = vadd.f32 %v589_v15, %v586_v33 }
  0xcf   :  { %3165 = sst [smem:[#allocation35_spill]] %s2024_s25  ;;  %v612_v13 = vmul.f32 %v611_v31, %v1370_v26  ;;  %v3038_v61 = vstv %s2024_s25  ;;  %v602_v60 = vadd.f32 %v600_v52, %v596_v4  ;;  %v429_v4 = vmul.f32 %v427_v34, %v1504_v38 }
  0xd0   :  { %s2042_s26 = sld [smem:[#allocation7 + $0x1d]]  ;;  %v616_v10 = vmul.f32 %v3038_v61, %v1391_v37  ;;  %v393_v1 = vmin.f32 %v375_v16, %v391_v30  ;;  %v621_v33 = vstv %s2036_s8  ;;  %v443_v34 = vmul.f32 %v441_v7, %v1504_v38 }
  0xd1   :  { %s2054_s12 = sld [smem:[#allocation9 + $0x1d]]  ;;  %v678_v0 = vstv %s3169_s21  ;;  %v606_v61 = vadd.f32 %v605_v28, %v602_v60  ;;  %v453_v30 = vmul.f32 %v451_v40, %v1492_v24  ;;  %v457_v40 = vmul.f32 %v455_v45, %v1504_v38 }
  0xd2   :  { %s3172_s2 = sld [smem:[#allocation38_spill]]  ;;  %v618_v56 = vadd.f32 %v616_v10, %v612_v13  ;;  %v592_v9 = vmin.f32 %v560_v35, %v590_v41  ;;  %v431_v10 = vadd.f32 %v429_v4, %v425_v51  ;;  %vm2447_vm7 = vcmp.ge.f32.partialorder %v1370_v26, %v678_v0 }
  0xd3   :  { %s2066_s6 = sld [smem:[#allocation10 + $0x1d]]  ;;  %v681_v42 = vstv %s3170_s18  ;;  %v459_v35 = vadd.f32 %v457_v40, %v453_v30 }
  0xd4   :  { %s2072_s24 = sld [smem:[#allocation7 + $0x1e]]  ;;  %vm2454_vm8 = vcmp.ge.f32.partialorder %v1391_v37, %v681_v42 }
  0xd5   :  { %s2082_s17 = sld [smem:[#allocation9 + $0x1e]]  ;;  %vm684_vm11 = vmand %vm2447_vm7, %vm2454_vm8  ;;  %vm2755_vm7 = vcmp.ge.f32.partialorder %v1504_v38, %v681_v42 }
  0xd6   :  { %s2090_s21 = sld [smem:[#allocation10 + $0x1e]]  ;;  %v3037_v21 = vstv %s2042_s26 }
  0xd7   :  { %3171 = sst [smem:[#allocation45_spill]] %s2054_s12  ;;  %v628_v44 = vmul.f32 %v3037_v21, %v1370_v26  ;;  %v631_v11 = vstv %s2054_s12  ;;  %v439_v21 = vmul.f32 %v437_v3, %v1492_v24 }
  0xd8   :  { %v686_v39 = vstv %s3172_s2  ;;  %s2096_s11 = sld [smem:[#allocation7 + $0x1f]]  ;;  %v632_v52 = vmul.f32 %v631_v11, %v1391_v37 }
  0xd9   :  { %s2109_s25 = sld [smem:[#allocation9 + $0x1f]]  ;;  %v637_v43 = vstv %s2066_s6  ;;  %v445_v45 = vadd.f32 %v443_v34, %v439_v21  ;;  %v608_v21 = vmin.f32 %v2085_v19, %v606_v61  ;;  %v473_v19 = vmul.f32 %v471_v27, %v1504_v38 }
  0xda   :  { %3175 = sst [smem:[#allocation38_spill]] %s2072_s24  ;;  %v643_v16 = vstv %s2072_s24  ;;  %v634_v13 = vadd.f32 %v632_v52, %v628_v44  ;;  %v622_v44 = vadd.f32 %v621_v33, %v618_v56  ;;  %v469_v56 = vmul.f32 %v467_v59, %v1492_v24 }
  0xdb   :  { %3176 = sst [smem:[#allocation46_spill]] %s2082_s17  ;;  %v644_v60 = vmul.f32 %v643_v16, %v1370_v26  ;;  %v647_v7 = vstv %s2082_s17  ;;  %v463_v59 = vadd.f32 %v461_v57, %v459_v35  ;;  %v2203_v61 = vsel %vm412_vm6, 0.0, %v2076_v14 }
  0xdc   :  { %3178 = sst [smem:[#allocation22_spill]] %s2090_s21  ;;  %v648_v12 = vmul.f32 %v647_v7, %v1391_v37  ;;  %v638_v34 = vadd.f32 %v637_v43, %v634_v13  ;;  %v653_v30 = vstv %s2090_s21  ;;  %v2205_v13 = vmin.f32 %v592_v9, %v622_v44 }
  0xdd   :  { %s2118_s5 = sld [smem:[#allocation10 + $0x1f]]  ;;  %v485_v27 = vmul.f32 %v483_v23, %v1492_v24  ;;  %v449_v14 = vadd.f32 %v447_v48, %v445_v45  ;;  %v475_v3 = vadd.f32 %v473_v19, %v469_v56  ;;  %v501_v45 = vmul.f32 %v499_v47, %v1492_v24 }
  0xde   :  { %3179 = sst [smem:[#allocation47_spill]] %s2096_s11  ;;  %v659_v52 = vstv %s2096_s11  ;;  %v650_v41 = vadd.f32 %v648_v12, %v644_v60  ;;  %v435_v12 = vadd.f32 %v433_v8, %v431_v10  ;;  %v2210_v8 = vadd.f32 %v393_v1, %v1751_v20 }
  0xdf   :  { %3180 = sst [smem:[#allocation48_spill]] %s2109_s25  ;;  %v660_v51 = vmul.f32 %v659_v52, %v1370_v26  ;;  %v663_v4 = vstv %s2109_s25  ;;  %v2223_v9 = vmin.f32 %v608_v21, %v638_v34  ;;  %v489_v10 = vmul.f32 %v487_v36, %v1504_v38 }
  0xe0   :  { %s2126_s18 = sld [smem:[#allocation6 + $0x8]]  ;;  %v664_v60 = vmul.f32 %v663_v4, %v1391_v37  ;;  %v2217_v57 = vadd.f32 %v653_v30, %v650_v41  ;;  %v465_v48 = vmin.f32 %v435_v12, %v463_v59  ;;  %v479_v36 = vadd.f32 %v477_v55, %v475_v3 }
  0xe1   :  { %s2149_s20 = sld [smem:[#allocation6 + $0x9]]  ;;  %v491_v56 = vadd.f32 %v489_v10, %v485_v27  ;;  %v517_v10 = vmul.f32 %v515_v18, %v1492_v24  ;;  %vm2485_vm9 = vcmp.le.f32.partialorder %v1370_v26, %v686_v39  ;;  %vm2748_vm6 = vcmp.ge.f32.partialorder %v1492_v24, %v678_v0 }
  0xe2   :  { %s2158_s27 = sld [smem:[#allocation6 + $0xa]]  ;;  %v666_v54 = vadd.f32 %v664_v60, %v660_v51  ;;  %v656_v21 = vmin.f32 %v2205_v13, %v2217_v57  ;;  %v505_v60 = vmul.f32 %v503_v53, %v1504_v38  ;;  %vm2605_vm12 = vmand %vm684_vm11, %vm2485_vm9 }
  0xe3   :  { %3182 = sst [smem:[#allocation23_spill]] %s2118_s5  ;;  %v669_v1 = vstv %s2118_s5  ;;  %v495_v19 = vadd.f32 %v493_v58, %v491_v56  ;;  %v481_v58 = vmin.f32 %v449_v14, %v479_v36 }
  0xe4   :  { %s3189_s24 = sld [smem:[#allocation39_spill]]  ;;  %v670_v34 = vadd.f32 %v669_v1, %v666_v54  ;;  %v507_v53 = vadd.f32 %v505_v60, %v501_v45 }
  0xe5   :  { %s2163_s12 = sld [smem:[#allocation6 + $0xb]]  ;;  %v2297_v18 = vmin.f32 %v465_v48, %v495_v19 }
  0xe6   :  { %3183 = sst [smem:[#allocation49_spill]] %s2126_s18  ;;  %v3090_v23 = vstv %s2126_s18  ;;  %v511_v45 = vadd.f32 %v509_v6, %v507_v53 }
  0xe7   :  { %3186 = sst [smem:[#allocation50_spill]] %s2149_s20  ;;  %v3093_v35 = vstv %s2149_s20  ;;  %vm2626_vm13 = vcmp.ge.f32.partialorder %v1370_v26, %v3090_v23 }
  0xe8   :  { %3188 = sst [smem:[#allocation24_spill]] %s2158_s27  ;;  %v3098_v55 = vstv %s2158_s27  ;;  %v2312_v48 = vmin.f32 %v481_v58, %v511_v45  ;;  %v549_v45 = vmul.f32 %v547_v49, %v1492_v24  ;;  %vm2633_vm14 = vcmp.ge.f32.partialorder %v1391_v37, %v3093_v35 }
  0xe9   :  { %s2173_s29 = sld [smem:[#allocation7 + $0x20]]  ;;  %vm2672_vm0 = vcmp.le.f32.partialorder %v1370_v26, %v3098_v55  ;;  %vm966_vm2 = vmand %vm2626_vm13, %vm2633_vm14 }
  0xea   :  { %s2185_s17 = sld [smem:[#allocation9 + $0x20]]  ;;  %v691_v40 = vstv %s3189_s24  ;;  %vm2774_vm8 = vmand %vm966_vm2, %vm2672_vm0 }
  0xeb   :  { %3190 = sst [smem:[#allocation39_spill]] %s2163_s12  ;;  %v3099_v59 = vstv %s2163_s12  ;;  %vm2523_vm10 = vcmp.le.f32.partialorder %v1391_v37, %v691_v40  ;;  %vm2838_vm13 = vcmp.le.f32.partialorder %v1504_v38, %v691_v40 }
  0xec   :  { %s2188_s11 = sld [smem:[#allocation10 + $0x20]]  ;;  %vm694_vm15 = vmand %vm2605_vm12, %vm2523_vm10  ;;  %vm2685_vm1 = vcmp.le.f32.partialorder %v1391_v37, %v3099_v59  ;;  %vm2800_vm10 = vcmp.le.f32.partialorder %v1492_v24, %v686_v39 }
  0xed   :  { %s2207_s28 = sld [smem:[#allocation7 + $0x21]]  ;;  %vm976_vm11 = vmand %vm2774_vm8, %vm2685_vm1 }
  0xee   :  { %s2219_s0 = sld [smem:[#allocation9 + $0x21]] }
  0xef   :  { %3191 = sst [smem:[#allocation51_spill]] %s2173_s29  ;;  %v705_v44 = vstv %s2173_s29 }
  0xf0   :  { %3192 = sst [smem:[#allocation52_spill]] %s2185_s17  ;;  %v706_v41 = vmul.f32 %v705_v44, %v1370_v26  ;;  %v709_v51 = vstv %s2185_s17  ;;  %v707_v59 = vmul.f32 %v705_v44, %v1492_v24 }
  0xf1   :  { %s2226_s7 = sld [smem:[#allocation10 + $0x21]]  ;;  %v710_v47 = vmul.f32 %v709_v51, %v1391_v37 }
  0xf2   :  { %3193 = sst [smem:[#allocation53_spill]] %s2188_s11  ;;  %v3051_v54 = vstv %s2188_s11 }
  0xf3   :  { %3195 = sst [smem:[#allocation25_spill]] %s2207_s28  ;;  %v719_v12 = vstv %s2207_s28  ;;  %v712_v13 = vadd.f32 %v710_v47, %v706_v41  ;;  %v672_v41 = vmin.f32 %v2223_v9, %v670_v34  ;;  %v521_v47 = vmul.f32 %v519_v5, %v1504_v38 }
  0xf4   :  { %3197 = sst [smem:[#allocation26_spill]] %s2219_s0  ;;  %v720_v27 = vmul.f32 %v719_v12, %v1370_v26  ;;  %v723_v57 = vstv %s2219_s0 }
  0xf5   :  { %s2233_s25 = sld [smem:[#allocation7 + $0x22]]  ;;  %v724_v3 = vmul.f32 %v723_v57, %v1391_v37  ;;  %v2301_v9 = vadd.f32 %v3051_v54, %v712_v13  ;;  %v523_v19 = vadd.f32 %v521_v47, %v517_v10  ;;  %v533_v13 = vmul.f32 %v531_v17, %v1492_v24 }
  0xf6   :  { %s2243_s9 = sld [smem:[#allocation9 + $0x22]] }
  0xf7   :  { %3198 = sst [smem:[#allocation54_spill]] %s2226_s7  ;;  %v729_v60 = vstv %s2226_s7  ;;  %v726_v6 = vadd.f32 %v724_v3, %v720_v27  ;;  %v527_v17 = vadd.f32 %v525_v29, %v523_v19 }
  0xf8   :  { %s2254_s19 = sld [smem:[#allocation10 + $0x22]] }
  0xf9   :  { %s2260_s22 = sld [smem:[#allocation7 + $0x23]] }
  0xfa   :  { %s2270_s21 = sld [smem:[#allocation9 + $0x23]] }
  0xfb   :  { %s2276_s15 = sld [smem:[#allocation10 + $0x23]]  ;;  %v733_v56 = vstv %s2233_s25 }
  0xfc   :  { %3200 = sst [smem:[#allocation27_spill]] %s2243_s9  ;;  %v734_v14 = vmul.f32 %v733_v56, %v1370_v26  ;;  %v3053_v36 = vstv %s2243_s9  ;;  %v735_v44 = vmul.f32 %v733_v56, %v1492_v24 }
  0xfd   :  { %s2283_s28 = sld [smem:[#allocation7 + $0x24]]  ;;  %v738_v5 = vmul.f32 %v3053_v36, %v1391_v37  ;;  %v537_v36 = vmul.f32 %v535_v32, %v1504_v38 }
  0xfe   :  { %3201 = sst [smem:[#allocation55_spill]] %s2254_s19  ;;  %v3055_v34 = vstv %s2254_s19 }
  0xff   :  { %s2295_s1 = sld [smem:[#allocation9 + $0x24]]  ;;  %v749_v53 = vstv %s2260_s22  ;;  %v740_v27 = vadd.f32 %v738_v5, %v734_v14  ;;  %v539_v32 = vadd.f32 %v537_v36, %v533_v13  ;;  %v553_v5 = vmul.f32 %v551_v62, %v1504_v38 }
 0x100   :  { %s2307_s5 = sld [smem:[#allocation10 + $0x24]]  ;;  %v750_v3 = vmul.f32 %v749_v53, %v1370_v26  ;;  %v3054_v54 = vstv %s2270_s21  ;;  %v529_v62 = vmin.f32 %v2297_v18, %v527_v17 }
 0x101   :  { %3205 = sst [smem:[#allocation28_spill]] %s2276_s15  ;;  %v754_v58 = vmul.f32 %v3054_v54, %v1391_v37  ;;  %v3060_v10 = vstv %s2276_s15  ;;  %v2339_v47 = vadd.f32 %v3055_v34, %v740_v27  ;;  %v2349_v54 = vadd.f32 %v729_v60, %v726_v6 }
 0x102   :  { %s2310_s29 = sld [smem:[#allocation7 + $0x25]]  ;;  %v674_v27 = vmin.f32 %v656_v21, %v672_v41  ;;  %v3215_v6 = vstv %s1884_s16  ;;  %v555_v21 = vadd.f32 %v553_v5, %v549_v45 }
 0x103   :  { %s2321_s9 = sld [smem:[#allocation9 + $0x25]]  ;;  %v765_v14 = vstv %s2283_s28  ;;  %v756_v29 = vadd.f32 %v754_v58, %v750_v3  ;;  %v543_v13 = vadd.f32 %v3215_v6, %v539_v32  ;;  %v746_v3 = vmin.f32 %v2301_v9, %v2339_v47 }
 0x104   :  { %s2330_s0 = sld [smem:[#allocation10 + $0x25]]  ;;  %v766_v49 = vmul.f32 %v765_v14, %v1370_v26  ;;  %v3219_v9 = vstv %s1927_s13  ;;  %v559_v6 = vadd.f32 %v557_v63, %v555_v21 }
 0x105   :  { %3207 = sst [smem:[#allocation29_spill]] %s2295_s1  ;;  %v769_v19 = vstv %s2295_s1  ;;  %v760_v58 = vadd.f32 %v3060_v10, %v756_v29  ;;  %v565_v47 = vmul.f32 %v3219_v9, %v1492_v24  ;;  %v545_v5 = vmin.f32 %v2312_v48, %v543_v13 }
 0x106   :  { %s2342_s17 = sld [smem:[#allocation7 + $0x26]]  ;;  %v770_v36 = vmul.f32 %v769_v19, %v1391_v37  ;;  %v3067_v29 = vstv %s2307_s5  ;;  %v771_v0 = vmul.f32 %v769_v19, %v1504_v38 }
 0x107   :  { %s2355_s23 = sld [smem:[#allocation9 + $0x26]]  ;;  %v762_v32 = vmin.f32 %v2349_v54, %v760_v58 }
 0x108   :  { %3209 = sst [smem:[#allocation40_spill]] %s2310_s29  ;;  %v3063_v34 = vstv %s2310_s29  ;;  %v772_v41 = vadd.f32 %v770_v36, %v766_v49 }
 0x109   :  { %3211 = sst [smem:[#allocation41_spill]] %s2321_s9  ;;  %v782_v18 = vmul.f32 %v3063_v34, %v1370_v26  ;;  %v3062_v17 = vstv %s2321_s9 }
 0x10a   :  { %3212 = sst [smem:[#allocation30_spill]] %s2330_s0  ;;  %v786_v45 = vmul.f32 %v3062_v17, %v1391_v37  ;;  %v3069_v49 = vstv %s2330_s0  ;;  %v776_v34 = vadd.f32 %v3067_v29, %v772_v41  ;;  %v597_v41 = vmul.f32 %v595_v50, %v1492_v24 }
 0x10b   :  { %s2360_s3 = sld [smem:[#allocation10 + $0x26]]  ;;  %v2442_v50 = vmin.f32 %v529_v62, %v559_v6 }
 0x10c   :  { %3213 = sst [smem:[#allocation42_spill]] %s2342_s17  ;;  %v3066_v36 = vstv %s2342_s17  ;;  %v788_v9 = vadd.f32 %v786_v45, %v782_v18 }
 0x10d   :  { %s2370_s11 = sld [smem:[#allocation7 + $0x27]]  ;;  %v798_v10 = vmul.f32 %v3066_v36, %v1370_v26  ;;  %v801_v48 = vstv %s2355_s23 }
 0x10e   :  { %s3217_s19 = sld [smem:[#allocation43_spill]]  ;;  %v802_v63 = vmul.f32 %v801_v48, %v1391_v37  ;;  %v792_v45 = vadd.f32 %v3069_v49, %v788_v9  ;;  %v2435_v49 = vadd.f32 %v674_v27, %v1747_v46  ;;  %v778_v27 = vmin.f32 %v746_v3, %v776_v34 }
 0x10f   :  { %s2376_s16 = sld [smem:[#allocation9 + $0x27]] }
 0x110   :  { %s3220_s15 = sld [smem:[#allocation44_spill]]  ;;  %v804_v29 = vadd.f32 %v802_v63, %v798_v10  ;;  %v2473_v3 = vmin.f32 %v762_v32, %v792_v45 }
 0x111   :  { %3214 = sst [smem:[#allocation56_spill]] %s2360_s3  ;;  %v3076_v21 = vstv %s2360_s3 }
 0x112   :  { %s2386_s29 = sld [smem:[#allocation10 + $0x27]]  ;;  %v808_v6 = vadd.f32 %v3076_v21, %v804_v29 }
 0x113   :  { %3216 = sst [smem:[#allocation57_spill]] %s2370_s11 }
 0x114   :  { %s2391_s13 = sld [smem:[#allocation7 + $0x28]]  ;;  %v3224_v54 = vstv %s3217_s19 }
 0x115   :  { %3218 = sst [smem:[#allocation43_spill]] %s2376_s16  ;;  %v569_v58 = vmul.f32 %v3224_v54, %v1504_v38  ;;  %v3073_v54 = vstv %s2370_s11 }
 0x116   :  { %s3223_s7 = sld [smem:[#allocation31_spill]]  ;;  %v3226_v13 = vstv %s3220_s15 }
 0x117   :  { %s2402_s9 = sld [smem:[#allocation9 + $0x28]]  ;;  %v581_v17 = vmul.f32 %v3226_v13, %v1492_v24  ;;  %v571_v18 = vadd.f32 %v569_v58, %v565_v47  ;;  %v814_v47 = vmul.f32 %v3073_v54, %v1370_v26  ;;  %v3071_v58 = vstv %s2376_s16 }
 0x118   :  { %3221 = sst [smem:[#allocation44_spill]] %s2386_s29 }
 0x119   :  { %s2413_s10 = sld [smem:[#allocation10 + $0x28]]  ;;  %v575_v9 = vadd.f32 %v573_v25, %v571_v18  ;;  %v3079_v18 = vstv %s2386_s29 }
 0x11a   :  { %3222 = sst [smem:[#allocation58_spill]] %s2391_s13  ;;  %v829_v62 = vstv %s2391_s13 }
 0x11b   :  { %s2418_s1 = sld [smem:[#allocation7 + $0x29]] }
 0x11c   :  { %v3230_v36 = vstv %s3223_s7  ;;  %s2430_s0 = sld [smem:[#allocation9 + $0x29]] }
 0x11d   :  { %3225 = sst [smem:[#allocation31_spill]] %s2402_s9  ;;  %v585_v13 = vmul.f32 %v3230_v36, %v1504_v38  ;;  %v818_v36 = vmul.f32 %v3071_v58, %v1391_v37  ;;  %v830_v58 = vmul.f32 %v829_v62, %v1370_v26  ;;  %v3078_v34 = vstv %s2402_s9 }
 0x11e   :  { %s2440_s30 = sld [smem:[#allocation10 + $0x29]]  ;;  %v834_v54 = vmul.f32 %v3078_v34, %v1391_v37  ;;  %v810_v34 = vmin.f32 %v778_v27, %v808_v6 }
 0x11f   :  { %3227 = sst [smem:[#allocation59_spill]] %s2413_s10  ;;  %v587_v10 = vadd.f32 %v585_v13, %v581_v17  ;;  %v601_v17 = vmul.f32 %v599_v2, %v1504_v38  ;;  %v820_v13 = vadd.f32 %v818_v36, %v814_v47  ;;  %v2480_v2 = vmin.f32 %v545_v5, %v575_v9 }
 0x120   :  { %s2460_s4 = sld [smem:[#allocation7 + $0x2a]]  ;;  %v3082_v32 = vstv %s2413_s10  ;;  %v836_v36 = vadd.f32 %v834_v54, %v830_v58 }
 0x121   :  { %s2471_s11 = sld [smem:[#allocation9 + $0x2a]]  ;;  %v603_v29 = vadd.f32 %v601_v17, %v597_v41  ;;  %v3081_v45 = vstv %s2418_s1  ;;  %v2495_v5 = vadd.f32 %v589_v15, %v587_v10  ;;  %v613_v41 = vmul.f32 %v611_v31, %v1492_v24 }
 0x122   :  { %s2478_s15 = sld [smem:[#allocation10 + $0x2a]]  ;;  %v824_v9 = vadd.f32 %v3079_v18, %v820_v13  ;;  %v846_v17 = vmul.f32 %v3081_v45, %v1370_v26  ;;  %v3080_v21 = vstv %s2430_s0  ;;  %v840_v27 = vadd.f32 %v3082_v32, %v836_v36 }
 0x123   :  { %s3242_s3 = sld [smem:[#allocation35_spill]]  ;;  %v850_v15 = vmul.f32 %v3080_v21, %v1391_v37  ;;  %v2515_v31 = vadd.f32 %v605_v28, %v603_v29  ;;  %v3251_v28 = vstv %s2042_s26 }
 0x124   :  { %3232 = sst [smem:[#allocation36_spill]] %s2440_s30  ;;  %v855_v6 = vstv %s2440_s30  ;;  %v629_v29 = vmul.f32 %v3251_v28, %v1492_v24  ;;  %v826_v36 = vmin.f32 %v2473_v3, %v824_v9 }
 0x125   :  { %s2491_s9 = sld [smem:[#allocation7 + $0x2b]]  ;;  %v609_v9 = vmin.f32 %v2480_v2, %v2515_v31 }
 0x126   :  { %3237 = sst [smem:[#allocation37_spill]] %s2460_s4  ;;  %v861_v13 = vstv %s2460_s4 }
 0x127   :  { %3240 = sst [smem:[#allocation32_spill]] %s2471_s11  ;;  %v862_v18 = vmul.f32 %v861_v13, %v1370_v26  ;;  %v865_v21 = vstv %s2471_s11 }
 0x128   :  { %3241 = sst [smem:[#allocation33_spill]] %s2478_s15  ;;  %v866_v32 = vmul.f32 %v865_v21, %v1391_v37 }
 0x129   :  { %s2506_s13 = sld [smem:[#allocation9 + $0x2b]]  ;;  %v3247_v54 = vstv %s3242_s3 }
 0x12a   :  { %s2511_s7 = sld [smem:[#allocation10 + $0x2b]]  ;;  %v617_v58 = vmul.f32 %v3247_v54, %v1504_v38  ;;  %v852_v54 = vadd.f32 %v850_v15, %v846_v17  ;;  %v593_v17 = vmin.f32 %v2442_v50, %v2495_v5  ;;  %v633_v15 = vmul.f32 %v631_v11, %v1504_v38 }
 0x12b   :  { %3245 = sst [smem:[#allocation34_spill]] %s2491_s9  ;;  %v877_v3 = vstv %s2491_s9 }
 0x12c   :  { %s2531_s14 = sld [smem:[#allocation7 + $0x2c]]  ;;  %v619_v45 = vadd.f32 %v617_v58, %v613_v41  ;;  %v856_v28 = vadd.f32 %v855_v6, %v852_v54  ;;  %v871_v41 = vstv %s2478_s15  ;;  %v868_v58 = vadd.f32 %v866_v32, %v862_v18 }
 0x12d   :  { %s2540_s3 = sld [smem:[#allocation9 + $0x2c]]  ;;  %v878_v50 = vmul.f32 %v877_v3, %v1370_v26  ;;  %v635_v5 = vadd.f32 %v633_v15, %v629_v29  ;;  %v842_v54 = vmin.f32 %v810_v34, %v840_v27  ;;  %v645_v32 = vmul.f32 %v643_v16, %v1492_v24 }
 0x12e   :  { %s2546_s10 = sld [smem:[#allocation10 + $0x2c]]  ;;  %v623_v18 = vadd.f32 %v621_v33, %v619_v45  ;;  %v872_v31 = vadd.f32 %v871_v41, %v868_v58  ;;  %v649_v34 = vmul.f32 %v647_v7, %v1504_v38  ;;  %v858_v58 = vmin.f32 %v826_v36, %v856_v28 }
 0x12f   :  { %s2557_s11 = sld [smem:[#allocation7 + $0x2d]]  ;;  %v881_v11 = vstv %s2506_s13  ;;  %v639_v45 = vadd.f32 %v637_v43, %v635_v5  ;;  %v661_v43 = vmul.f32 %v659_v52, %v1492_v24  ;;  %v665_v28 = vmul.f32 %v663_v4, %v1504_v38 }
 0x130   :  { %3246 = sst [smem:[#allocation35_spill]] %s2511_s7  ;;  %v882_v2 = vmul.f32 %v881_v11, %v1391_v37  ;;  %v3091_v29 = vstv %s2511_s7  ;;  %v651_v52 = vadd.f32 %v649_v34, %v645_v32  ;;  %v874_v32 = vmin.f32 %v842_v54, %v872_v31 }
 0x131   :  { %s2565_s16 = sld [smem:[#allocation9 + $0x2d]]  ;;  %v641_v34 = vmin.f32 %v609_v9, %v639_v45  ;;  %v667_v7 = vadd.f32 %v665_v28, %v661_v43  ;;  %v696_v9 = vsel %vm694_vm15, 0.0, %v2435_v49  ;;  %vm685_vm15 = vmand %vm2748_vm6, %vm2755_vm7 }
 0x132   :  { %s2574_s30 = sld [smem:[#allocation10 + $0x2d]]  ;;  %v893_v15 = vstv %s2531_s14  ;;  %v884_v27 = vadd.f32 %v882_v2, %v878_v50  ;;  %vm2908_vm1 = vmand %vm685_vm15, %vm2800_vm10 }
 0x133   :  { %s2585_s29 = sld [smem:[#allocation7 + $0x2e]]  ;;  %v894_v33 = vmul.f32 %v893_v15, %v1370_v26  ;;  %v897_v16 = vstv %s2540_s3  ;;  %vm695_vm6 = vmand %vm2908_vm1, %vm2838_vm13 }
 0x134   :  { %3252 = sst [smem:[#allocation45_spill]] %s2546_s10  ;;  %v898_v50 = vmul.f32 %v897_v16, %v1391_v37  ;;  %v903_v2 = vstv %s2546_s10  ;;  %v888_v63 = vadd.f32 %v3091_v29, %v884_v27  ;;  %v625_v29 = vmin.f32 %v593_v17, %v623_v18 }
 0x135   :  { %s2594_s26 = sld [smem:[#allocation9 + $0x2e]]  ;;  %v909_v25 = vstv %s2557_s11  ;;  %v655_v17 = vadd.f32 %v653_v30, %v651_v52 }
 0x136   :  { %s2613_s6 = sld [smem:[#allocation10 + $0x2e]]  ;;  %v900_v5 = vadd.f32 %v898_v50, %v894_v33  ;;  %v910_v27 = vmul.f32 %v909_v25, %v1370_v26  ;;  %v890_v54 = vmin.f32 %v858_v58, %v888_v63  ;;  %v671_v58 = vadd.f32 %v669_v1, %v667_v7 }
 0x137   :  { %s2621_s15 = sld [smem:[#allocation7 + $0x2f]]  ;;  %v913_v23 = vstv %s2565_s16  ;;  %v657_v28 = vmin.f32 %v625_v29, %v655_v17  ;;  %v711_v17 = vmul.f32 %v709_v51, %v1504_v38  ;;  %v698_v51 = vadd.f32 %v696_v9, %v2203_v61 }
 0x138   :  { %s2644_s9 = sld [smem:[#allocation9 + $0x2f]]  ;;  %v914_v4 = vmul.f32 %v913_v23, %v1391_v37  ;;  %v904_v10 = vadd.f32 %v903_v2, %v900_v5  ;;  %v919_v18 = vstv %s2574_s30  ;;  %v673_v55 = vmin.f32 %v641_v34, %v671_v58 }
 0x139   :  { %s2653_s20 = sld [smem:[#allocation10 + $0x2f]]  ;;  %v925_v33 = vstv %s2585_s29  ;;  %v883_v61 = vmul.f32 %v881_v11, %v1504_v38 }
 0x13a   :  { %v916_v31 = vadd.f32 %v914_v4, %v910_v27  ;;  %v926_v50 = vmul.f32 %v925_v33, %v1370_v26  ;;  %s3273_s27 = sld [smem:[#allocation27_spill]]  ;;  %v906_v5 = vmin.f32 %v874_v32, %v904_v10 }
 0x13b   :  { %v929_v35 = vstv %s2594_s26  ;;  %s3274_s8 = sld [smem:[#allocation18_spill]] }
 0x13c   :  { %v930_v30 = vmul.f32 %v929_v35, %v1391_v37  ;;  %v920_v43 = vadd.f32 %v919_v18, %v916_v31  ;;  %v935_v63 = vstv %s2613_s6  ;;  %s3275_s12 = sld [smem:[#allocation19_spill]] }
 0x13d   :  { %v941_v49 = vstv %s2621_s15  ;;  %s3277_s4 = sld [smem:[#allocation53_spill]] }
 0x13e   :  { %v932_v27 = vadd.f32 %v930_v30, %v926_v50  ;;  %v942_v1 = vmul.f32 %v941_v49, %v1370_v26  ;;  %v945_v4 = vstv %s2644_s9  ;;  %v922_v7 = vmin.f32 %v890_v54, %v920_v43  ;;  %s3282_s10 = sld [smem:[#allocation20_spill]] }
 0x13f   :  { %v946_v31 = vmul.f32 %v945_v4, %v1391_v37  ;;  %v951_v32 = vstv %s2653_s20  ;;  %v721_v26 = vmul.f32 %v719_v12, %v1492_v24  ;;  %v725_v37 = vmul.f32 %v723_v57, %v1504_v38  ;;  %s3288_s22 = sld [smem:[#allocation40_spill]]  ;;  %s1283_s20 = smov [#allocation12]  }
 0x140   :  { %v936_v29 = vadd.f32 %v935_v63, %v932_v27  ;;  %v3276_v34 = vstv %s3273_s27  ;;  %v713_v12 = vadd.f32 %v711_v17, %v707_v59  ;;  %v751_v57 = vmul.f32 %v749_v53, %v1492_v24  ;;  %s3280_s27 = sld [smem:[#allocation55_spill]]  ;;  %s1010_s30 = sshll.u32 %s1283_s20, 4  ;;  %s1011_s30 = int_to_ptr.vmem [resolvable:$true] %s1010_s30 }
 0x141   :  { %v948_v10 = vadd.f32 %v946_v31, %v942_v1  ;;  %v739_v54 = vmul.f32 %v3276_v34, %v1504_v38  ;;  %v3281_v30 = vstv %s3274_s8  ;;  %v727_v53 = vadd.f32 %v725_v37, %v721_v26  ;;  %s3290_s7 = sld [smem:[#allocation41_spill]]  ;;  %s1248_s15 = scalar_lea.vmem %s1011_s30, 16 }
 0x142   :  { %v938_v50 = vmin.f32 %v906_v5, %v936_v29  ;;  %vm2731_vm4 = vcmp.ge.f32.partialorder %v1492_v24, %v3281_v30  ;;  %v3285_v9 = vstv %s3275_s12  ;;  %v3289_v43 = vstv %s2270_s21  ;;  %s3296_s12 = sld [smem:[#allocation42_spill]]  ;;  %p1249_p11 = scmp.ne.s32.totalorder %s1011_s30, %s1248_s15 }
 0x143   :  { %v952_v56 = vadd.f32 %v951_v32, %v948_v10  ;;  %vm2738_vm5 = vcmp.ge.f32.partialorder %v1504_v38, %v3285_v9  ;;  %v741_v58 = vadd.f32 %v739_v54, %v735_v44  ;;  %v755_v5 = vmul.f32 %v3289_v43, %v1504_v38  ;;  %s3297_s21 = sld [smem:[#allocation28_spill]]  ;;  %s1252_s3 = scalar_lea.vmem %s1011_s30, 32 }
 0x144   :  { %v3295_v31 = vstv %s3277_s4  ;;  %v767_v17 = vmul.f32 %v765_v14, %v1492_v24  ;;  %v2778_v10 = vmin.f32 %v657_v28, %v673_v55  ;;  %v731_v14 = vadd.f32 %v729_v60, %v727_v53  ;;  %s3301_s28 = sld [smem:[#allocation57_spill]]  ;;  %vm403_vm14 = vmand %vm2731_vm4, %vm2738_vm5  ;;  %p1253_p12 = scmp.lt.s32.totalorder %s1011_s30, %s1011_s30 }
 0x145   :  { %v717_v29 = vadd.f32 %v3295_v31, %v713_v12  ;;  %v954_v26 = vmin.f32 %v922_v7, %v952_v56  ;;  %v3302_v7 = vstv %s3282_s10  ;;  %s3305_s17 = sld [smem:[#allocation21_spill]]  ;;  %v757_v36 = vadd.f32 %v755_v5, %v751_v57  ;;  %p1254_p13 = scmp.lt.s32.totalorder %s1252_s3, %s1248_s15 }
 0x146   :  { %v3300_v37 = vstv %s3280_s27  ;;  %vm2787_vm9 = vcmp.le.f32.partialorder %v1492_v24, %v3302_v7  ;;  %v773_v45 = vadd.f32 %v771_v0, %v767_v17  ;;  %v3306_v44 = vstv %s3288_s22  ;;  %s3307_s19 = sld [smem:[#allocation43_spill]] }
 0x147   :  { %v745_v19 = vadd.f32 %v3300_v37, %v741_v58  ;;  %v783_v34 = vmul.f32 %v3306_v44, %v1492_v24  ;;  %v3308_v55 = vstv %s3290_s7  ;;  %v956_v28 = vmin.f32 %v938_v50, %v954_v26  ;;  %s3313_s4 = sld [smem:[#allocation30_spill]]  ;;  %vm2894_vm0 = vmand %vm403_vm14, %vm2787_vm9  ;;  %p1255_p0 = por %p1254_p13, %p1253_p12 }
 0x148   :  { %v787_v60 = vmul.f32 %v3308_v55, %v1504_v38  ;;  %v3312_v57 = vstv %s3296_s12  ;;  %s3314_s18 = sld [smem:[#allocation31_spill]]  ;;  %v803_v30 = vmul.f32 %v801_v48, %v1504_v38  ;;  %v3317_v9 = vstv %s2307_s5 }
 0x149   :  { %v747_v12 = vmin.f32 %v717_v29, %v745_v19  ;;  %v799_v56 = vmul.f32 %v3312_v57, %v1492_v24  ;;  %v3315_v50 = vstv %s3297_s21  ;;  %s3316_s2 = sld [smem:[#allocation56_spill]]  ;;  %v777_v53 = vadd.f32 %v3317_v9, %v773_v45  ;;  %p1256_p1 = pnand %p1255_p0, %p1249_p11 }
 0x14a   :  { %v761_v39 = vadd.f32 %v3315_v50, %v757_v36  ;;  %v789_v58 = vadd.f32 %v787_v60, %v783_v34  ;;  %v3318_v43 = vstv %s3301_s28  ;;  %v958_v31 = vadd.f32 %v956_v28, %v1747_v46  ;;  %s3323_s5 = sld [smem:[#allocation44_spill]] }
 0x14b   :  { %v815_v5 = vmul.f32 %v3318_v43, %v1492_v24  ;;  %v3319_v29 = vstv %s3305_s17  ;;  %v805_v52 = vadd.f32 %v803_v30, %v799_v56  ;;  %v831_v26 = vmul.f32 %v829_v62, %v1492_v24  ;;  %s3330_s27 = sld [smem:[#allocation59_spill]] }
 0x14c   :  { %vm2825_vm12 = vcmp.le.f32.partialorder %v1504_v38, %v3319_v29  ;;  %v3322_v17 = vstv %s3307_s19  ;;  %v763_v42 = vmin.f32 %v731_v14, %v761_v39  ;;  %v779_v37 = vmin.f32 %v747_v12, %v777_v53  ;;  %s3343_s13 = sld [smem:[#allocation49_spill]] }
 0x14d   :  { %v819_v0 = vmul.f32 %v3322_v17, %v1504_v38  ;;  %v3328_v19 = vstv %s3313_s4  ;;  %v978_v44 = vsel %vm976_vm11, 0.0, %v958_v31  ;;  %v3333_v60 = vstv %s2418_s1  ;;  %s3344_s14 = sld [smem:[#allocation50_spill]]  ;;  %vm413_vm2 = vmand %vm2894_vm0, %vm2825_vm12 }
 0x14e   :  { %v793_v7 = vadd.f32 %v3328_v19, %v789_v58  ;;  %v3329_v36 = vstv %s3314_s18  ;;  %v847_v40 = vmul.f32 %v3333_v60, %v1492_v24  ;;  %v980_v28 = vadd.f32 %v978_v44, %v698_v51  ;;  %s3348_s29 = sld [smem:[#allocation24_spill]] }
 0x14f   :  { %v835_v45 = vmul.f32 %v3329_v36, %v1504_v38  ;;  %v3331_v34 = vstv %s3316_s2  ;;  %v821_v55 = vadd.f32 %v819_v0, %v815_v5  ;;  %v3334_v14 = vstv %s2430_s0  ;;  %s3339_s0 = sld [smem:[#allocation35_spill]] }
 0x150   :  { %v809_v62 = vadd.f32 %v3331_v34, %v805_v52  ;;  %v795_v57 = vmin.f32 %v763_v42, %v793_v7  ;;  %v851_v12 = vmul.f32 %v3334_v14, %v1504_v38  ;;  %v3335_v50 = vstv %s3323_s5  ;;  %s3355_s11 = sld [smem:[#allocation39_spill]] }
 0x151   :  { %v837_v56 = vadd.f32 %v835_v45, %v831_v26  ;;  %v825_v39 = vadd.f32 %v3335_v50, %v821_v55  ;;  %v863_v9 = vmul.f32 %v861_v13, %v1492_v24  ;;  %v867_v53 = vmul.f32 %v865_v21, %v1504_v38 }
 0x152   :  { %v811_v30 = vmin.f32 %v779_v37, %v809_v62  ;;  %v989_v51 = vsel %vm986_vm3, %v980_v28, 0.0  ;;  %v3338_v58 = vstv %s3330_s27  ;;  %v853_v5 = vadd.f32 %v851_v12, %v847_v40 }
 0x153   :  { %v841_v43 = vadd.f32 %v3338_v58, %v837_v56  ;;  %v879_v13 = vmul.f32 %v877_v3, %v1492_v24  ;;  %991 = vadd.xlane.f32.xlu0 %v989_v51  ;;  %v827_v21 = vmin.f32 %v795_v57, %v825_v39  ;;  %v869_v59 = vadd.f32 %v867_v53, %v863_v9 }
 0x154   :  { %v895_v31 = vmul.f32 %v893_v15, %v1492_v24  ;;  %v857_v3 = vadd.f32 %v855_v6, %v853_v5  ;;  %v899_v1 = vmul.f32 %v897_v16, %v1504_v38  ;;  %v911_v27 = vmul.f32 %v909_v25, %v1492_v24 }
 0x155   :  { %v843_v29 = vmin.f32 %v811_v30, %v841_v43  ;;  %v873_v11 = vadd.f32 %v871_v41, %v869_v59  ;;  %v885_v15 = vadd.f32 %v883_v61, %v879_v13  ;;  %v915_v6 = vmul.f32 %v913_v23, %v1504_v38 }
 0x156   :  { %v927_v16 = vmul.f32 %v925_v33, %v1492_v24  ;;  %v859_v47 = vmin.f32 %v827_v21, %v857_v3  ;;  %v901_v17 = vadd.f32 %v899_v1, %v895_v31  ;;  %v931_v41 = vmul.f32 %v929_v35, %v1504_v38 }
 0x157   :  { %v943_v0 = vmul.f32 %v941_v49, %v1492_v24  ;;  %v875_v23 = vmin.f32 %v843_v29, %v873_v11  ;;  %v3347_v26 = vstv %s3339_s0  ;;  %v917_v33 = vadd.f32 %v915_v6, %v911_v27 }
 0x158   :  { %v889_v42 = vadd.f32 %v3347_v26, %v885_v15  ;;  %v947_v54 = vmul.f32 %v945_v4, %v1504_v38  ;;  %v905_v35 = vadd.f32 %v903_v2, %v901_v17  ;;  %v933_v37 = vadd.f32 %v931_v41, %v927_v16 }
 0x159   :  { %v3349_v19 = vstv %s3343_s13  ;;  %v3352_v7 = vstv %s3344_s14  ;;  %v677_v4 = vadd.f32 %v2778_v10, %v1751_v20  ;;  %v921_v45 = vadd.f32 %v919_v18, %v917_v33 }
 0x15a   :  { %vm2932_vm4 = vcmp.ge.f32.partialorder %v1492_v24, %v3349_v19  ;;  %vm2939_vm5 = vcmp.ge.f32.partialorder %v1504_v38, %v3352_v7  ;;  %v891_v2 = vmin.f32 %v859_v47, %v889_v42  ;;  %v949_v44 = vadd.f32 %v947_v54, %v943_v0 }
 0x15b   :  { %v907_v34 = vmin.f32 %v875_v23, %v905_v35  ;;  %v937_v62 = vadd.f32 %v935_v63, %v933_v37  ;;  %vm967_vm7 = vmand %vm2932_vm4, %vm2939_vm5  ;;  %v3356_v55 = vstv %s3348_s29  ;;  %v415_v18 = vsel %vm413_vm2, 0.0, %v2210_v8 }
 0x15c   :  { %vm970_vm8 = vcmp.le.f32.partialorder %v1492_v24, %v3356_v55  ;;  %v923_v10 = vmin.f32 %v891_v2, %v921_v45  ;;  %v953_v46 = vadd.f32 %v951_v32, %v949_v44  ;;  %v697_v63 = vsel %vm695_vm6, 0.0, %v677_v4 }
 0x15d   :  { %v939_v60 = vmin.f32 %v907_v34, %v937_v62  ;;  %vm972_vm9 = vmand %vm967_vm7, %vm970_vm8  ;;  %v3357_v28 = vstv %s3355_s11  ;;  %v699_v56 = vadd.f32 %v697_v63, %v415_v18 }
 0x15e   :  { %v955_v40 = vmin.f32 %v923_v10, %v953_v46  ;;  %vm975_vm10 = vcmp.le.f32.partialorder %v1504_v38, %v3357_v28 }
 0x15f   :  { %vm977_vm11 = vmand %vm972_vm9, %vm975_vm10 }
 0x160   :  { %v957_v57 = vmin.f32 %v939_v60, %v955_v40 }
 0x162   :  { %v959_v24 = vadd.f32 %v957_v57, %v1751_v20 }
 0x164   :  { %v979_v32 = vsel %vm977_vm11, 0.0, %v959_v24 }
 0x165   :  { %v981_v14 = vadd.f32 %v979_v32, %v699_v56 }
 0x167   :  { %v990_v12 = vsel %vm986_vm3, %v981_v14, 0.0 }
 0x168   :  { %993 = vadd.xlane.f32.xlu0 %v990_v12 }
 0x1dc   :  { %v992_v48 = vpop.xlane.xlu0 %991 }
 0x1f1   :  { %v994_v30 = vpop.xlane.xlu0 %993 }
 0x1f2   :  { %v995_v8 = vadd.f32 %v994_v30, %v992_v48 }
 0x1f4   :  { %v996_v50 = vrot.slane %v995_v8, 4 }
 0x1f6   :  { %v997_v39 = vadd.f32 %v996_v50, %v995_v8 }
 0x1f8   :  { %v998_v9 = vrot.slane %v997_v39, 2 }
 0x1fa   :  { %v999_v53 = vadd.f32 %v998_v9, %v997_v39 }
 0x1fc   :  { %v1000_v38 = vrot.slane %v999_v53, 1 }
 0x1fe   :  { %v1001_v51 = vadd.f32 %v1000_v38, %v999_v53 }
 0x200   :  { %1003 = vst [vmem:[#allocation12] sm:$0x1] %v1001_v51 }
 0x201   :  { %1259 = shalt.err (!%p1256_p1)
}
 0x202   :  { %s3358_s6 = sld [smem:[#allocation60_spill]] }
 0x208   :  { %1013 = dma.vmem_to_hbm [thread:$0]  %s1011_s30, 16, %s3358_s6, [#allocation4]  }
 0x209   :  { %1276 = dma.done.wait [#allocation4], 16  }
 0x20a   :  { %1277 = vsyncadd [#allocation4], 4294967280 }
 0x20b   :  { %1017 = vsyncpa [#allocation3], 1 }
 0x20c   :  { %1018 = vsyncpa [#allocation4], 1 }
 0x20d   :  { %1019 = vsyncpa [#allocation5], 1 }
 0x20e   :  { %1020 = vsyncpa [#allocation8], 1 }
 0x20f   :  { %1021 = vsyncpa [#allocation11], 1 }

</bundles_post_ra>
